<compile_context>
chip_gen: v6e
topology: v6e:2x2x1
jax: 0.10.0
libtpu: 0.0.40
codegen_flags: <defaults>
</compile_context>

<pallas_src>
import math

import jax
import jax.numpy as jnp
import numpy as np
from jax.experimental import pallas as pl
from jax.experimental.pallas import tpu as pltpu


# ----------------------------------------------------------------------------
# Pallas kernel: full DarcyFlow residual for one 128-wide batch block
# ----------------------------------------------------------------------------
def _darcy_kernel(f_ref, lv_ref, lh_ref, u_ref, a_ref, mask_ref, out_ref,
                  flow_ref):
    n = u_ref.shape[0]

    # bf16-stored operators, cast up once in VMEM (keeps f32 accumulation).
    lv = lv_ref[...].astype(jnp.float32)      # [2N, N]  = [Lx; Ly]
    lh = lh_ref[...].astype(jnp.float32)      # [N, 2N]  = [Lx | Ly]
    u = u_ref[...]                            # [N, B]   node solution fields
    a = a_ref[...]                            # [N, B]   coefficient fields

    # grad = [du/dx ; du/dy]   (single stacked MXU matmul)
    grad = jnp.dot(lv, u, preferred_element_type=jnp.float32)        # [2N, B]

    # flow = a * grad   (VPU, written into a stacked scratch buffer)
    flow_ref[0:n, :] = a * grad[0:n, :]
    flow_ref[n:2 * n, :] = a * grad[n:2 * n, :]

    # div flow = Lx @ flow_x + Ly @ flow_y   (single stacked MXU matmul)
    div = jnp.dot(lh, flow_ref[...], preferred_element_type=jnp.float32)  # [N, B]

    # pde_loss = (div + f) * (1 - mask)
    out_ref[...] = (div + f_ref[0, 0]) * (1.0 - mask_ref[...])


# ----------------------------------------------------------------------------
# Host-side: pre-compose the [N, N] derivative operators from the edge list
# ----------------------------------------------------------------------------
def _build_composite_operators(edge_index, edge_attr, num_nodes,
                               index_derivative_x=0, index_derivative_y=1):
    src = edge_index[0]
    dst = edge_index[1]
    onehot_src = jax.nn.one_hot(src, num_nodes, dtype=jnp.float32)   # [E, N]
    onehot_dst = jax.nn.one_hot(dst, num_nodes, dtype=jnp.float32)   # [E, N]
    gd = onehot_src - onehot_dst                                     # [E, N]

    def per_axis(col):
        attr = edge_attr[:, col]
        active = attr != 0.0
        # 1/edge_attr on active edges, 0 elsewhere (padded / inactive edges).
        w = jnp.where(active, 1.0 / jnp.where(active, attr, 1.0), 0.0)   # [E]
        d = (active.astype(jnp.float32)[:, None] * onehot_dst).T         # [N, E]
        cnt = jnp.maximum(jnp.sum(d, axis=1, keepdims=True), 1.0)        # [N, 1]
        dw = (d * w[None, :]) / cnt                                      # mean agg
        # Composite operator: derivative(x) == Lx @ x
        return jnp.dot(dw, gd, precision=jax.lax.Precision.HIGHEST)      # [N, N]

    lx = per_axis(index_derivative_x)
    ly = per_axis(index_derivative_y)
    return lx, ly


# ----------------------------------------------------------------------------
# Batched wrapper: B independent node fields on the same mesh (lane-dense)
# ----------------------------------------------------------------------------
def darcy_flow_operator_batched(u, a, edge_index, edge_attr, f=1.0, mask=None,
                                index_derivative_x=0, index_derivative_y=1,
                                batch_block=128):
    u = jnp.asarray(u, jnp.float32)           # [N, B]
    a = jnp.asarray(a, jnp.float32)           # [N, B]
    n, b = u.shape

    lx, ly = _build_composite_operators(edge_index, edge_attr, n,
                                        index_derivative_x, index_derivative_y)
    # bf16 storage: halves operator DMA bytes; entries are bf16-exact here.
    lv = jnp.concatenate([lx, ly], axis=0).astype(jnp.bfloat16)   # [2N, N]
    lh = jnp.concatenate([lx, ly], axis=1).astype(jnp.bfloat16)   # [N, 2N]

    if mask is None:
        mask_arr = jnp.zeros((n, b), jnp.float32)
    else:
        mask_arr = jnp.asarray(mask, jnp.float32)
        if mask_arr.ndim == 1:
            mask_arr = mask_arr[:, None]
        mask_arr = jnp.broadcast_to(mask_arr, (n, b))

    bn = batch_block
    b_pad = int(math.ceil(b / bn) * bn)
    pad = b_pad - b
    if pad:
        u = jnp.pad(u, ((0, 0), (0, pad)))
        a = jnp.pad(a, ((0, 0), (0, pad)))
        mask_arr = jnp.pad(mask_arr, ((0, 0), (0, pad)))

    f_arr = jnp.full((1, 1), f, dtype=jnp.float32)

    out = pl.pallas_call(
        _darcy_kernel,
        out_shape=jax.ShapeDtypeStruct((n, b_pad), jnp.float32),
        grid=(b_pad // bn,),
        in_specs=[
            pl.BlockSpec((1, 1), lambda i: (0, 0),
                         memory_space=pltpu.MemorySpace.SMEM),        # f scalar
            pl.BlockSpec((2 * n, n), lambda i: (0, 0)),               # Lv (bf16)
            pl.BlockSpec((n, 2 * n), lambda i: (0, 0)),               # Lh (bf16)
            pl.BlockSpec((n, bn), lambda i: (0, i)),                  # U
            pl.BlockSpec((n, bn), lambda i: (0, i)),                  # A
            pl.BlockSpec((n, bn), lambda i: (0, i)),                  # mask
        ],
        out_specs=pl.BlockSpec((n, bn), lambda i: (0, i)),
        scratch_shapes=[pltpu.VMEM((2 * n, bn), jnp.float32)],        # stacked flow
        compiler_params=pltpu.CompilerParams(
            dimension_semantics=("parallel",)),
    )(f_arr, lv, lh, u, a, mask_arr)

    return out[:, :b]


# ----------------------------------------------------------------------------
# Module-faithful entry point: DarcyFlowOperator.forward for one graph
# ----------------------------------------------------------------------------
def darcy_flow_operator(x_out, x_a, edge_index, edge_attr, f=1.0, mask=None,
                        index_derivative_node=0, index_derivative_x=0,
                        index_derivative_y=1):
    u = jnp.asarray(x_out)[:, index_derivative_node:index_derivative_node + 1]
    a = jnp.asarray(x_a)[:, index_derivative_node:index_derivative_node + 1]
    out = darcy_flow_operator_batched(
        u, a, edge_index, edge_attr, f=f, mask=mask,
        index_derivative_x=index_derivative_x,
        index_derivative_y=index_derivative_y)
    return out[:, 0]   # [N]


# ----------------------------------------------------------------------------
# Pure-JAX reference: independent edge-level implementation (HIGHEST precision)
# ----------------------------------------------------------------------------
def _reference_edge_level(u, a, edge_index, edge_attr, f, mask,
                          index_derivative_x=0, index_derivative_y=1):
    n = u.shape[0]
    src, dst = edge_index[0], edge_index[1]
    oh_src = jax.nn.one_hot(src, n, dtype=jnp.float32)
    oh_dst = jax.nn.one_hot(dst, n, dtype=jnp.float32)
    gd = oh_src - oh_dst
    dot = lambda A, B: jnp.dot(A, B, precision=jax.lax.Precision.HIGHEST)

    def deriv(x, col):
        attr = edge_attr[:, col]
        active = attr != 0.0
        w = jnp.where(active, 1.0 / jnp.where(active, attr, 1.0), 0.0)[:, None]
        d = (active.astype(jnp.float32)[:, None] * oh_dst).T
        cnt = jnp.maximum(jnp.sum(d, axis=1, keepdims=True), 1.0)
        return dot(d, w * dot(gd, x)) / cnt

    gx = deriv(u, index_derivative_x)
    gy = deriv(u, index_derivative_y)
    fx, fy = a * gx, a * gy
    div = deriv(fx, index_derivative_x) + deriv(fy, index_derivative_y)
    pde = div + f
    if mask is not None:
        pde = pde * (1.0 - mask)
    return pde


if __name__ == "__main__":
    # Regular 16x16 grid graph (the Darcy/FNO use case): bidirectional nearest-
    # neighbor edges, edge_attr = pos[src] - pos[dst].
    nx_, ny_ = 16, 16
    dx, dy = 0.1, 0.1
    N = nx_ * ny_

    src_l, dst_l, attr_l = [], [], []
    nid = lambda i, j: i * ny_ + j
    for i in range(nx_):
        for j in range(ny_):
            for di, dj, ax, ay in ((1, 0, dx, 0.0), (-1, 0, -dx, 0.0),
                                   (0, 1, 0.0, dy), (0, -1, 0.0, -dy)):
                ii_, jj_ = i + di, j + dj
                if 0 <= ii_ < nx_ and 0 <= jj_ < ny_:
                    src_l.append(nid(ii_, jj_))
                    dst_l.append(nid(i, j))
                    attr_l.append((ax, ay))

    edge_index = jnp.array([src_l, dst_l], dtype=jnp.int32)      # [2, E]
    edge_attr = jnp.array(attr_l, dtype=jnp.float32)             # [E, 2]

    key = jax.random.PRNGKey(0)
    k1, k2 = jax.random.split(key)
    B = 256                                                       # batched solves
    u_batch = jax.random.normal(k1, (N, B), dtype=jnp.float32)         # out.x fields
    a_batch = jax.random.uniform(k2, (N, B), dtype=jnp.float32) + 0.5  # a_x.x fields

    # boundary mask (1 on domain boundary)
    ii = jnp.arange(N) // ny_
    jj = jnp.arange(N) % ny_
    mask = ((ii == 0) | (ii == nx_ - 1) | (jj == 0) | (jj == ny_ - 1)).astype(jnp.float32)

    # --- batched, lane-dense path (2 grid points -> both TCs on v7x) ---------
    pde = darcy_flow_operator_batched(u_batch, a_batch, edge_index, edge_attr,
                                      f=1.0, mask=mask)
    pde = jax.block_until_ready(pde)

    ref = jax.block_until_ready(
        _reference_edge_level(u_batch, a_batch, edge_index, edge_attr, 1.0,
                              jnp.broadcast_to(mask[:, None], (N, B))))
    np.testing.assert_allclose(np.asarray(pde), np.asarray(ref),
                               rtol=2e-2, atol=1e-1)

    # --- module-faithful single-graph path -----------------------------------
    pde1 = darcy_flow_operator(u_batch[:, :1], a_batch[:, :1], edge_index,
                               edge_attr, f=1.0, mask=mask)
    pde1 = jax.block_until_ready(pde1)
    np.testing.assert_allclose(np.asarray(pde1), np.asarray(ref[:, 0]),
                               rtol=2e-2, atol=1e-1)

    print("KERNEL_OK")
</pallas_src>

<mosaic_0001>
module attributes {stable_mosaic.version = 11 : i64} {
  func.func @_darcy_kernel(%arg0: i32, %arg1: memref<1x1xf32, #tpu.memory_space<smem>>, %arg2: memref<512x256xbf16, #tpu.memory_space<vmem>>, %arg3: memref<256x512xbf16, #tpu.memory_space<vmem>>, %arg4: memref<256x128xf32, #tpu.memory_space<vmem>>, %arg5: memref<256x128xf32, #tpu.memory_space<vmem>>, %arg6: memref<256x128xf32, #tpu.memory_space<vmem>>, %arg7: memref<256x128xf32, #tpu.memory_space<vmem>>, %arg8: memref<512x128xf32, #tpu.memory_space<vmem>>) attributes {dimension_semantics = [#tpu.dimension_semantics<parallel>], iteration_bounds = array<i64: 2>, scalar_prefetch = 0 : i64, scratch_operands = 1 : i64, tpu.core_type = #tpu.core_type<tc>, window_params = [{transform_indices = @transform_0, window_bounds = array<i64: 1, 1>}, {pipeline_mode = #tpu.pipeline_mode<synchronous>, transform_indices = @transform_1, window_bounds = array<i64: 512, 256>}, {pipeline_mode = #tpu.pipeline_mode<synchronous>, transform_indices = @transform_2, window_bounds = array<i64: 256, 512>}, {transform_indices = @transform_3, window_bounds = array<i64: 256, 128>}, {transform_indices = @transform_4, window_bounds = array<i64: 256, 128>}, {transform_indices = @transform_5, window_bounds = array<i64: 256, 128>}, {transform_indices = @transform_6, window_bounds = array<i64: 256, 128>}]} {
    %c0 = arith.constant 0 : index
    %c0_0 = arith.constant 0 : index
    %0 = vector.load %arg2[%c0, %c0_0] : memref<512x256xbf16, #tpu.memory_space<vmem>>, vector<512x256xbf16>
    %1 = arith.extf %0 : vector<512x256xbf16> to vector<512x256xf32>
    %c0_1 = arith.constant 0 : index
    %c0_2 = arith.constant 0 : index
    %2 = vector.load %arg3[%c0_1, %c0_2] : memref<256x512xbf16, #tpu.memory_space<vmem>>, vector<256x512xbf16>
    %3 = arith.extf %2 : vector<256x512xbf16> to vector<256x512xf32>
    %c0_3 = arith.constant 0 : index
    %c0_4 = arith.constant 0 : index
    %4 = vector.load %arg4[%c0_3, %c0_4] : memref<256x128xf32, #tpu.memory_space<vmem>>, vector<256x128xf32>
    %c0_5 = arith.constant 0 : index
    %c0_6 = arith.constant 0 : index
    %5 = vector.load %arg5[%c0_5, %c0_6] : memref<256x128xf32, #tpu.memory_space<vmem>>, vector<256x128xf32>
    %cst = arith.constant dense<0.000000e+00> : vector<512x128xf32>
    %6 = tpu.matmul %1, %4, %cst {dimension_numbers = #tpu.dot_dimension_numbers<[1], [0], [0], [1], [0, 0, 1, 1], [], []>} : vector<512x256xf32>, vector<256x128xf32>, vector<512x128xf32> -> vector<512x128xf32>
    %7 = vector.extract_strided_slice %6 {offsets = [0, 0], sizes = [256, 128], strides = [1, 1]} : vector<512x128xf32> to vector<256x128xf32>
    %8 = arith.mulf %5, %7 : vector<256x128xf32>
    %c0_7 = arith.constant 0 : index
    %c0_8 = arith.constant 0 : index
    %9 = vector.load %arg8[%c0_7, %c0_8] : memref<512x128xf32, #tpu.memory_space<vmem>>, vector<256x128xf32>
    tpu.vector_store %arg8[%c0_7, %c0_8], %8 {strides = array<i32>} : memref<512x128xf32, #tpu.memory_space<vmem>>, vector<256x128xf32>,
    %10 = vector.extract_strided_slice %6 {offsets = [256, 0], sizes = [256, 128], strides = [1, 1]} : vector<512x128xf32> to vector<256x128xf32>
    %11 = arith.mulf %5, %10 : vector<256x128xf32>
    %c256 = arith.constant 256 : index
    %c0_9 = arith.constant 0 : index
    %12 = vector.load %arg8[%c256, %c0_9] : memref<512x128xf32, #tpu.memory_space<vmem>>, vector<256x128xf32>
    tpu.vector_store %arg8[%c256, %c0_9], %11 {strides = array<i32>} : memref<512x128xf32, #tpu.memory_space<vmem>>, vector<256x128xf32>,
    %c0_10 = arith.constant 0 : index
    %c0_11 = arith.constant 0 : index
    %13 = vector.load %arg8[%c0_10, %c0_11] : memref<512x128xf32, #tpu.memory_space<vmem>>, vector<512x128xf32>
    %cst_12 = arith.constant dense<0.000000e+00> : vector<256x128xf32>
    %14 = tpu.matmul %3, %13, %cst_12 {dimension_numbers = #tpu.dot_dimension_numbers<[1], [0], [0], [1], [0, 0, 1, 1], [], []>} : vector<256x512xf32>, vector<512x128xf32>, vector<256x128xf32> -> vector<256x128xf32>
    %c0_13 = arith.constant 0 : index
    %c0_14 = arith.constant 0 : index
    %15 = memref.load %arg1[%c0_13, %c0_14] : memref<1x1xf32, #tpu.memory_space<smem>>
    %16 = vector.broadcast %15 : f32 to vector<256x128xf32>
    %17 = arith.addf %14, %16 : vector<256x128xf32>
    %c0_15 = arith.constant 0 : index
    %c0_16 = arith.constant 0 : index
    %18 = vector.load %arg6[%c0_15, %c0_16] : memref<256x128xf32, #tpu.memory_space<vmem>>, vector<256x128xf32>
    %cst_17 = arith.constant 1.000000e+00 : f32
    %19 = vector.broadcast %cst_17 : f32 to vector<256x128xf32>
    %20 = arith.subf %19, %18 : vector<256x128xf32>
    %21 = arith.mulf %17, %20 : vector<256x128xf32>
    %c0_18 = arith.constant 0 : index
    %c0_19 = arith.constant 0 : index
    %22 = vector.load %arg7[%c0_18, %c0_19] : memref<256x128xf32, #tpu.memory_space<vmem>>, vector<256x128xf32>
    tpu.vector_store %arg7[%c0_18, %c0_19], %21 {strides = array<i32>} : memref<256x128xf32, #tpu.memory_space<vmem>>, vector<256x128xf32>,
    return
  }
  func.func @transform_0(%arg0: i32) -> (i32, i32) {
    %c0_i32 = arith.constant 0 : i32
    %c0_i32_0 = arith.constant 0 : i32
    %c0_i32_1 = arith.constant 0 : i32
    return %c0_i32, %c0_i32_0 : i32, i32
  }
  func.func @transform_1(%arg0: i32) -> (i32, i32) {
    %c0_i32 = arith.constant 0 : i32
    %c0_i32_0 = arith.constant 0 : i32
    %c0_i32_1 = arith.constant 0 : i32
    return %c0_i32, %c0_i32_0 : i32, i32
  }
  func.func @transform_2(%arg0: i32) -> (i32, i32) {
    %c0_i32 = arith.constant 0 : i32
    %c0_i32_0 = arith.constant 0 : i32
    %c0_i32_1 = arith.constant 0 : i32
    return %c0_i32, %c0_i32_0 : i32, i32
  }
  func.func @transform_3(%arg0: i32) -> (i32, i32) {
    %c0_i32 = arith.constant 0 : i32
    %c0_i32_0 = arith.constant 0 : i32
    return %c0_i32, %arg0 : i32, i32
  }
  func.func @transform_4(%arg0: i32) -> (i32, i32) {
    %c0_i32 = arith.constant 0 : i32
    %c0_i32_0 = arith.constant 0 : i32
    return %c0_i32, %arg0 : i32, i32
  }
  func.func @transform_5(%arg0: i32) -> (i32, i32) {
    %c0_i32 = arith.constant 0 : i32
    %c0_i32_0 = arith.constant 0 : i32
    return %c0_i32, %arg0 : i32, i32
  }
  func.func @transform_6(%arg0: i32) -> (i32, i32) {
    %c0_i32 = arith.constant 0 : i32
    %c0_i32_0 = arith.constant 0 : i32
    return %c0_i32, %arg0 : i32, i32
  }
}

</mosaic_0001>

<bundles_post_ra>
// kernel: tpu_custom_call.1
= control target key start
LH: loop header
LB: loop body
LE: loop exit
PB: predicated region body
PF: predicated region fallthrough
CT: control target
= control target key end

     0   :  { %s3395_s0 = inlined_call_operand.<no memory space> [shape: f32[1,1], index: 0, kind: input, shape index: {}]   ;;  %s3396_s1 = inlined_call_operand.hbm [shape: bf16[512,256], index: 1, kind: input, shape index: {}]   ;;  %s3397_s2 = inlined_call_operand.hbm [shape: bf16[256,512], index: 2, kind: input, shape index: {}]   ;;  %s3398_s3 = inlined_call_operand.hbm [shape: f32[256,256], index: 3, kind: input, shape index: {}]   ;;  %s3399_s4 = inlined_call_operand.hbm [shape: f32[256,256], index: 4, kind: input, shape index: {}]   ;;  %s3400_s5 = inlined_call_operand.hbm [shape: f32[256,256], index: 5, kind: input, shape index: {}]   ;;  %s3401_s6 = inlined_call_operand.hbm [shape: f32[256,256], index: 6, kind: output, shape index: {}]  }
   0x1   :  { %3419 = sst [smem:[#allocation23_spill]] %s3396_s1 }
   0x2   :  { %3420 = sst [smem:[#allocation24_spill]] %s3398_s3 }
   0x3   :  { %11 = sst [smem:[#allocation3]] %s3395_s0 }
   0x4   :  { %12 = vsyncpa [#allocation5], 0 }
   0x5   :  { %13 = vsyncpa [#allocation8], 0 }
   0x6   :  { %14 = vsyncpa [#allocation6], 0 }
   0x7   :  { %16 = vsyncpa [#allocation6 + $0x1], 0  ;;  %s2488_s23 = smov 0   ;;  %s2490_s24 = smov 0  }
   0x8   :  { %s2492_s25 = smov 0   ;;  %s2494_s26 = smov 0  }
   0x9 LB: > { %3421 = sst [smem:[#allocation17_spill]] %s2422_s23  ;;  %s2509_s0 = sadd.s32 4294967295, %s2434_s26   ;;  %s2434_s26 = sphi %s2494_s26, %s3453_s26   ;;  %s2430_s25 = sphi %s2492_s25, %s3458_s25   ;;  %s2426_s24 = sphi %s2490_s24, %s3457_s24   ;;  %s2422_s23 = sphi %s2488_s23, %s3456_s23  }
   0xa   : > { %3422 = sst [smem:[#allocation18_spill]] %s2430_s25  ;;  %s2119_s27 = sadd.s32 4294967294, %s2434_s26  }
   0xb   : > { %3423 = sst [smem:[#allocation19_spill]] %s2434_s26  ;;  %s2513_s28 = sadd.s32 1, %s2434_s26  }
   0xc   : > { %3424 = sst [smem:[#allocation20_spill]] %s2513_s28  ;;  %s92_s29 = sadd.s32 1, %s2430_s25 }
   0xd   : > { %s89_s30 = ssub.s32 %s2434_s26, %s2513_s28  ;;  %p99_p0 = scmp.ne.s32.totalorder %s2430_s25, %s2426_s24 }
   0xe   : > { %p90_p1 = scmp.eq.s32.totalorder %s89_s30, 0  ;;  %p100_p2 = scmp.eq.s32.totalorder %s2434_s26, 0 }
   0xf   : > { %p105_p3 = scmp.ne.s32.totalorder %s2426_s24, %s2422_s23  ;;  %p3409_p4 = scmp.eq.s32.totalorder %s2509_s0, 0 }
  0x10   : > { %s2525_s7 = scalar_select %p90_p1, %s2430_s25, %s92_s29  }
  0x11   : > { %p2527_p5 = por %p100_p2, %p99_p0  ;;  %p2533_p6 = por %p3409_p4, %p105_p3 }
  0x12   : > { %3425 = sst [smem:[#allocation21_spill]] %s2525_s7  ;;  %p181_p7 = scmp.eq.s32.totalorder %s2509_s0, 1 }
  0x13   : > { %s3427_s9 = scalar_select %p2533_p6, 1, 0 }
  0x14   : > { %p187_p8 = scmp.eq.s32.totalorder %s2119_s27, 1  ;;  %p2120_p9 = scmp.ge.s32.totalorder %s2434_s26, 1 }
  0x15   : > { %p194_p10 = scmp.lt.s32.totalorder %s2434_s26, 3  ;;  %p2540_p11 = por %p181_p7, %p99_p0 }
  0x16   : > { %p2544_p12 = por %p187_p8, %p105_p3  ;;  %s2436_s13 = smov [#allocation4]  }
  0x17   : > { %s3428_s10 = scalar_select %p2540_p11, 1, 0 }
  0x18   : > { %s3429_s11 = scalar_select %p2544_p12, 1, 0 }
  0x19   : > { %p2548_p13 = pnand %p2120_p9, %p194_p10  ;;  %s209_s14 = sshll.u32 %s2436_s13, 4  ;;  %s210_s14 = int_to_ptr.vmem [resolvable:$true] %s209_s14 }
  0x1a   : > { %3430 = sst [smem:[#allocation22_spill]] %s3429_s11  ;;  %p2180_p3 = scmp.lt.s32.totalorder %s2434_s26, 2 }
  0x1b   : > { %s3431_s12 = scalar_select %p2548_p13, 1, 0 }
  0x1c   : > { %p2157_p1 = pneg %p2548_p13  ;;  %s236_s16 = sand.u32 1, %s2434_s26  }
  0x1d   : > { %s2237_s17 = scalar_lea.vmem %s210_s14, 8192  ;;  %p2245_p12 = scmp.lt.s32.totalorder %s210_s14, %s210_s14 }
  0x1e   : > { %p2556_p2 = pnand %p2157_p1, %p3409_p4  ;;  %p2238_p8 = scmp.ne.s32.totalorder %s210_s14, %s2237_s17 }
  0x1f   : > { %p2246_p11 = scmp.lt.s32.totalorder %s2237_s17, %s2237_s17 }
  0x20   : > { %s3432_s15 = scalar_select %p2556_p2, 1, 0 }
  0x21   : > { %p3410_p7 = pneg %p2556_p2  ;;  %p2247_p6 = por %p2246_p11, %p2245_p12 }
  0x23   : > { %p2240_p9 = pnand %p2238_p8, %p3410_p7 }
  0x25   : > { %p2241_p10 = pneg %p2240_p9 }
  0x27   : > { %p2248_p1 = pnand %p2247_p6, %p2241_p10 }
  0x29   : > { %2251 = shalt.err (!%p2248_p1)
}
  0x2a   : > { %s3404_s18 = smov 128   ;;  %s3406_s19 = smov 8  }
  0x2b   : > { %s3433_s1 = sld [smem:[#allocation23_spill]]  ;;  %p2580_p11 = pnand %p2180_p3, %p2527_p5 }
  0x2c   : > { %s238_s27 = sand.u32 1, %s2430_s25   ;;  %s2586_s29 = sshll.u32 %s2434_s26, 7 }
  0x2d   : > { %s2588_s30 = sshll.u32 %s238_s27, 8  ;;  %s3435_s3 = sld [smem:[#allocation24_spill]] }
  0x2e   : > { %s240_s8 = scalar_lea.vmem [#allocation9], %s2588_s30  ;;  %s2605_s27 = scalar_lea.sflag [#allocation5], %s236_s16 }
  0x2f   : > { %p2611_p6 = pneg %p2580_p11 }
  0x31   : > { %2160 = dma.hbm_to_vmem [thread:$0]  (!%p2556_p2), %s3433_s1, 8192, %s210_s14, [#allocation5], %s3404_s18, %s3404_s18, %s3406_s19  }
  0x32   : > { %s246_s14 = sshll.u32 %s240_s8, 4  ;;  %s2603_s19 = scalar_lea.hbm %s3399_s4, %s2586_s29  ;;  %s2597_s14 = int_to_ptr.vmem [resolvable:$true] %s246_s14 }
  0x33   : > { %s2594_s20 = scalar_lea.hbm %s3435_s3, %s2586_s29  ;;  %s2257_s7 = scalar_lea.hbm %s3435_s3, 8192 }
  0x34   : > { %s2252_s1 = scalar_lea.hbm %s2594_s20, 4096  ;;  %p2258_p8 = scmp.lt.s32.totalorder %s2594_s20, %s3435_s3 }
  0x35   : > { %p2253_p5 = scmp.ne.s32.totalorder %s2594_s20, %s2252_s1  ;;  %p2259_p9 = scmp.lt.s32.totalorder %s2257_s7, %s2252_s1 }
  0x37   : > { %p2255_p12 = pnand %p2611_p6, %p2253_p5  ;;  %p2260_p10 = por %p2259_p9, %p2258_p8 }
  0x39   : > { %p2256_p3 = pneg %p2255_p12 }
  0x3b   : > { %p2261_p1 = pnand %p2260_p10, %p2256_p3 }
  0x3d   : > { %2264 = shalt.err (!%p2261_p1)
}
  0x3e   : > { %s2265_s16 = scalar_lea.vmem %s2597_s14, 4096  ;;  %s2439_s25 = smov [#allocation9]  }
  0x3f   : > { %p2266_p0 = scmp.ne.s32.totalorder %s2597_s14, %s2265_s16  ;;  %s2270_s17 = sshll.u32 %s2439_s25, 4  ;;  %s2271_s17 = int_to_ptr.vmem [resolvable:$false] %s2270_s17 }
  0x40   : > { %s2272_s8 = scalar_lea.vmem %s2271_s17, 8192  ;;  %p2273_p4 = scmp.lt.s32.totalorder %s2597_s14, %s2271_s17 }
  0x41   : > { %p2268_p5 = pnand %p2266_p0, %p2611_p6  ;;  %p2274_p7 = scmp.lt.s32.totalorder %s2272_s8, %s2265_s16 }
  0x43   : > { %p2269_p12 = pneg %p2268_p5  ;;  %p2275_p13 = por %p2274_p7, %p2273_p4 }
  0x45   : > { %p2276_p2 = pnand %p2275_p13, %p2269_p12 }
  0x47   : > { %2279 = shalt.err (!%p2276_p2)
}
  0x48   : > { %s2440_s1 = smov 256   ;;  %s3437_s7 = smov 8  }
  0x49   : > { %s3438_s18 = smov 128   ;;  %s260_s25 = scalar_lea.vmem [#allocation10], %s2588_s30 }
  0x4a   : > { %2167 = dma.hbm_to_vmem [thread:$0]  (!%p2580_p11), %s2594_s20, 4096, %s2597_s14, %s2605_s27, %s2440_s1, %s3438_s18, %s3437_s7  }
  0x4b   : > { %s266_s21 = sshll.u32 %s260_s25, 4  ;;  %s2441_s16 = smov [#allocation7]   ;;  %s2638_s21 = int_to_ptr.vmem [resolvable:$true] %s266_s21 }
  0x4c   : > { %s2640_s17 = sshll.u32 %s2441_s16, 4  ;;  %s2280_s8 = scalar_lea.hbm %s2603_s19, 4096  ;;  %s223_s17 = int_to_ptr.vmem [resolvable:$true] %s2640_s17 }
  0x4d   : > { %p2281_p4 = scmp.ne.s32.totalorder %s2603_s19, %s2280_s8  ;;  %s2285_s26 = scalar_lea.hbm %s3399_s4, 8192 }
  0x4e   : > { %p2286_p0 = scmp.lt.s32.totalorder %s2603_s19, %s3399_s4  ;;  %p2287_p7 = scmp.lt.s32.totalorder %s2285_s26, %s2280_s8 }
  0x4f   : > { %p2283_p13 = pnand %p2281_p4, %p2611_p6 }
  0x50   : > { %p2288_p3 = por %p2287_p7, %p2286_p0 }
  0x51   : > { %p2284_p2 = pneg %p2283_p13 }
  0x53   : > { %p2289_p8 = pnand %p2288_p3, %p2284_p2 }
  0x55   : > { %2292 = shalt.err (!%p2289_p8)
}
  0x56   : > { %s2293_s20 = scalar_lea.vmem %s2638_s21, 4096  ;;  %s2442_s14 = smov [#allocation10]  }
  0x57   : > { %p2294_p9 = scmp.ne.s32.totalorder %s2638_s21, %s2293_s20  ;;  %s2298_s3 = sshll.u32 %s2442_s14, 4  ;;  %s2299_s3 = int_to_ptr.vmem [resolvable:$false] %s2298_s3 }
  0x58   : > { %s2300_s28 = scalar_lea.vmem %s2299_s3, 8192  ;;  %p2301_p5 = scmp.lt.s32.totalorder %s2638_s21, %s2299_s3 }
  0x59   : > { %p2296_p10 = pnand %p2294_p9, %p2611_p6  ;;  %p2302_p12 = scmp.lt.s32.totalorder %s2300_s28, %s2293_s20 }
  0x5b   : > { %p2297_p1 = pneg %p2296_p10  ;;  %p2303_p4 = por %p2302_p12, %p2301_p5 }
  0x5d   : > { %p2304_p13 = pnand %p2303_p4, %p2297_p1 }
  0x5f   : > { %2307 = shalt.err (!%p2304_p13)
}
  0x60   : > { %2170 = dma.hbm_to_vmem [thread:$0]  (!%p2580_p11), %s2603_s19, 4096, %s2638_s21, %s2605_s27, %s2440_s1, %s3438_s18, %s3437_s7  }
  0x61   : > { %s2319_s23 = scalar_lea.vmem %s223_s17, 8192  ;;  %p3439_p0 = scmp.ne.s32.totalorder %s3432_s15, 0 }
  0x62   : > { %p2320_p2 = scmp.ne.s32.totalorder %s223_s17, %s2319_s23  ;;  %p2327_p9 = scmp.lt.s32.totalorder %s223_s17, %s223_s17 }
  0x63   : > { %p3440_p7 = pneg %p3439_p0  ;;  %p2328_p10 = scmp.lt.s32.totalorder %s2319_s23, %s2319_s23 }
  0x65   : > { %p2322_p3 = pnand %p2320_p2, %p3440_p7  ;;  %p2329_p1 = por %p2328_p10, %p2327_p9 }
  0x67   : > { %p2323_p8 = pneg %p2322_p3 }
  0x69   : > { %p2330_p5 = pnand %p2329_p1, %p2323_p8 }
  0x6b   : > { %2333 = shalt.err (!%p2330_p5)
}
  0x6c   : > { %s2443_s26 = smov 16   ;;  %s2681_s16 = scalar_lea.hbm %s3400_s5, %s2586_s29 }
  0x6d   : > { %2163 = dma.hbm_to_vmem [thread:$0]  (!%p3439_p0), %s3397_s2, 8192, %s223_s17, [#allocation8], %s2440_s1, %s2440_s1, %s2443_s26  }
  0x6e   : > { %s280_s8 = scalar_lea.vmem [#allocation11], %s2588_s30  ;;  %s2334_s15 = scalar_lea.hbm %s2681_s16, 4096 }
  0x6f   : > { %s286_s20 = sshll.u32 %s280_s8, 4  ;;  %p2335_p12 = scmp.ne.s32.totalorder %s2681_s16, %s2334_s15  ;;  %s287_s20 = int_to_ptr.vmem [resolvable:$true] %s286_s20 }
  0x70   : > { %s2339_s17 = scalar_lea.hbm %s3400_s5, 8192  ;;  %p2340_p2 = scmp.lt.s32.totalorder %s2681_s16, %s3400_s5 }
  0x71   : > { %p2337_p4 = pnand %p2335_p12, %p2611_p6  ;;  %p2341_p0 = scmp.lt.s32.totalorder %s2339_s17, %s2334_s15 }
  0x73   : > { %p2338_p13 = pneg %p2337_p4  ;;  %p2342_p7 = por %p2341_p0, %p2340_p2 }
  0x75   : > { %p2343_p3 = pnand %p2342_p7, %p2338_p13 }
  0x77   : > { %2346 = shalt.err (!%p2343_p3)
}
  0x78   : > { %s2347_s29 = scalar_lea.vmem %s287_s20, 4096  ;;  %s2444_s30 = smov [#allocation11]  }
  0x79   : > { %p2348_p8 = scmp.ne.s32.totalorder %s287_s20, %s2347_s29  ;;  %s2352_s26 = sshll.u32 %s2444_s30, 4  ;;  %s2353_s26 = int_to_ptr.vmem [resolvable:$false] %s2352_s26 }
  0x7a   : > { %s2354_s11 = scalar_lea.vmem %s2353_s26, 8192  ;;  %p2355_p1 = scmp.lt.s32.totalorder %s287_s20, %s2353_s26 }
  0x7b   : > { %p2350_p9 = pnand %p2348_p8, %p2611_p6  ;;  %p2356_p5 = scmp.lt.s32.totalorder %s2354_s11, %s2347_s29 }
  0x7d   : > { %p2351_p10 = pneg %p2350_p9  ;;  %p2357_p12 = por %p2356_p5, %p2355_p1 }
  0x7f   : > { %p2358_p4 = pnand %p2357_p12, %p2351_p10 }
  0x81   : > { %2361 = shalt.err (!%p2358_p4)
}
  0x82   : > { %2173 = dma.hbm_to_vmem [thread:$0]  (!%p2580_p11), %s2681_s16, 4096, %s287_s20, %s2605_s27, %s2440_s1, %s3438_s18, %s3437_s7  }
  0x83   : > { %p3441_p6 = scmp.ne.s32.totalorder %s3431_s12, 0 }
  0x84   : > { %p3442_p13 = scmp.eq.s32.totalorder (!%p3441_p6), %s2509_s0, 0 }
  0x85   : > { %298 = sbr.rel (%p3441_p6) target bundleno = 1027 (0x403), region = 44 }
  0x8a   : > { %2405 = dma.done.wait (%p3442_p13), [#allocation5], 8192   ;;  %p3443_p2 = pmov %p3442_p13 }
  0x8c   : > { %2407 = vsyncadd (%p3443_p2), [#allocation5], 4294959104  ;;  %p3444_p0 = pmov %p3443_p2 }
  0x8e   : > { %2409 = dma.done.wait (%p3444_p0), [#allocation8], 8192   ;;  %p3445_p7 = pmov %p3444_p0 }
  0x8f   : > { %s308_s22 = sand.u32 1, %s2509_s0   ;;  %s310_s27 = sand.u32 1, %s2426_s24  }
  0x90   : > { %2411 = vsyncadd (%p3445_p7), [#allocation8], 4294959104  ;;  %s2718_s12 = sshll.u32 %s310_s27, 8  ;;  %s309_s13 = scalar_lea.sflag [#allocation5], %s308_s22 }
  0x91   : > { %s2721_s1 = scalar_lea.vmem [#allocation9], %s2718_s12  ;;  %p3446_p11 = scmp.ne.s32.totalorder %s3427_s9, 0 }
  0x93   : > { %2413 = dma.done.wait (%p3446_p11), %s309_s13, 12288  }
  0x94   : > { %2415 = vsyncadd (%p3446_p11), %s309_s13, 4294955008  ;;  %v2445_v0 = vmov 0.0   ;;  %v768_v1 = vld [vmem:[%s2721_s1 + $0x78] sm:$0xff]  ;;  %v767_v2 = vld [vmem:[%s2721_s1 + $0x70] sm:$0xff]  ;;  %s2820_s9 = scalar_lea.vmem [#allocation10], %s2718_s12  ;;  %s1394_s7 = sld [smem:[#allocation3]] }
  0x95   : > { %817 = vmatprep.subr.mxu0 %v2445_v0  ;;  %1396 = vmatprep.subr.mxu1 %v2445_v0  ;;  %v766_v3 = vld [vmem:[%s2721_s1 + $0x68] sm:$0xff]  ;;  %v765_v4 = vld [vmem:[%s2721_s1 + $0x60] sm:$0xff]  ;;  %v764_v5 = vld [vmem:[%s2721_s1 + $0x58] sm:$0xff]  ;;  %s3210_s18 = scalar_lea.vmem [#allocation11], %s2718_s12  ;;  %s3220_s25 = scalar_lea.vmem [#allocation12], %s2718_s12 }
  0x96   : > { %818 = vmatpush1.msra.mxu0 %v768_v1  ;;  %v763_v6 = vld [vmem:[%s2721_s1 + $0x50] sm:$0xff]  ;;  %v762_v7 = vld [vmem:[%s2721_s1 + $0x48] sm:$0xff]  ;;  %v2741_v8 = vld [vmem:[#allocation4] sm:$0xff]  ;;  %s2138_s19 = sshll.u32 %s2509_s0, 7  ;;  %s1987_s21 = sshll.u32 %s3220_s25, 4  ;;  %s3349_s21 = int_to_ptr.vmem [resolvable:$true] %s1987_s21 }
  0x97   : > { %819 = vmatprep.subr.mxu0 %v2445_v0  ;;  %v434_v9 = vunpack.c.h.bf16 %v2741_v8  ;;  %v761_v10 = vld [vmem:[%s2721_s1 + $0x40] sm:$0xff]  ;;  %v760_v11 = vld [vmem:[%s2721_s1 + $0x38] sm:$0xff]  ;;  %v759_v12 = vld [vmem:[%s2721_s1 + $0x30] sm:$0xff]  ;;  %v433_v36 = vunpack.c.l.bf16 %v2741_v8  ;;  %s3347_s20 = scalar_lea.hbm %s3401_s6, %s2138_s19  ;;  %s3354_s0 = scalar_lea.sflag [#allocation6], %s310_s27 }
  0x98   : > { %820 = vmatpush1.msra.mxu0 %v767_v2  ;;  %v758_v13 = vld [vmem:[%s2721_s1 + $0x28] sm:$0xff]  ;;  %v757_v14 = vld [vmem:[%s2721_s1 + $0x20] sm:$0xff]  ;;  %v756_v15 = vld [vmem:[%s2721_s1 + $0x18] sm:$0xff]  ;;  %s2362_s15 = scalar_lea.vmem %s3349_s21, 4096  ;;  %p3447_p8 = scmp.ne.s32.totalorder %s3428_s10, 0 }
  0x99   : > { %821 = vmatprep.subr.mxu0 %v2445_v0  ;;  %881 = vmatprep.mubr.f32.mxu0 %v434_v9  ;;  %v755_v16 = vld [vmem:[%s2721_s1 + $0x10] sm:$0xff]  ;;  %v754_v17 = vld [vmem:[%s2721_s1 + $0x8] sm:$0xff]  ;;  %v753_v18 = vld [vmem:[%s2721_s1] sm:$0xff]  ;;  %p2363_p3 = scmp.ne.s32.totalorder %s3349_s21, %s2362_s15  ;;  %s2446_s14 = smov [#allocation12]  }
  0x9a   : > { %822 = vmatpush1.msra.mxu0 %v766_v3  ;;  %v784_v19 = vld [vmem:[%s2721_s1 + $0xf8] sm:$0xff]  ;;  %v783_v20 = vld [vmem:[%s2721_s1 + $0xf0] sm:$0xff]  ;;  %v782_v21 = vld [vmem:[%s2721_s1 + $0xe8] sm:$0xff]  ;;  %s2366_s3 = sshll.u32 %s2446_s14, 4  ;;  %s2367_s3 = int_to_ptr.vmem [resolvable:$false] %s2366_s3 }
  0x9b   : > { %823 = vmatprep.subr.mxu0 %v2445_v0  ;;  %v781_v22 = vld [vmem:[%s2721_s1 + $0xe0] sm:$0xff]  ;;  %v780_v23 = vld [vmem:[%s2721_s1 + $0xd8] sm:$0xff]  ;;  %v779_v24 = vld [vmem:[%s2721_s1 + $0xd0] sm:$0xff]  ;;  %p2364_p9 = pnand %p2363_p3, %p3447_p8  ;;  %s2368_s17 = scalar_lea.vmem %s2367_s3, 8192 }
  0x9c   : > { %824 = vmatpush1.msra.mxu0 %v765_v4  ;;  %v778_v25 = vld [vmem:[%s2721_s1 + $0xc8] sm:$0xff]  ;;  %v777_v26 = vld [vmem:[%s2721_s1 + $0xc0] sm:$0xff]  ;;  %v776_v27 = vld [vmem:[%s2721_s1 + $0xb8] sm:$0xff]  ;;  %p2369_p1 = scmp.lt.s32.totalorder %s3349_s21, %s2367_s3  ;;  %p2370_p5 = scmp.lt.s32.totalorder %s2368_s17, %s2362_s15 }
  0x9d   : > { %825 = vmatprep.subr.mxu0 %v2445_v0  ;;  %v775_v28 = vld [vmem:[%s2721_s1 + $0xb0] sm:$0xff]  ;;  %v774_v29 = vld [vmem:[%s2721_s1 + $0xa8] sm:$0xff]  ;;  %v773_v30 = vld [vmem:[%s2721_s1 + $0xa0] sm:$0xff]  ;;  %p2365_p10 = pneg %p2364_p9 }
  0x9e   : > { %826 = vmatpush1.msra.mxu0 %v764_v5  ;;  %v772_v31 = vld [vmem:[%s2721_s1 + $0x98] sm:$0xff]  ;;  %v771_v32 = vld [vmem:[%s2721_s1 + $0x90] sm:$0xff]  ;;  %v770_v33 = vld [vmem:[%s2721_s1 + $0x88] sm:$0xff]  ;;  %p2371_p12 = por %p2370_p5, %p2369_p1 }
  0x9f   : > { %827 = vmatprep.subr.mxu0 %v2445_v0  ;;  %v370_v34 = vld [vmem:[#allocation4 + $0x8] sm:$0xff]  ;;  %v769_v35 = vld [vmem:[%s2721_s1 + $0x80] sm:$0xff]  ;;  %v371_v38 = vld [vmem:[#allocation4 + $0x10] sm:$0xff] }
  0xa0   : > { %828 = vmatpush1.msra.mxu0 %v763_v6  ;;  %v436_v37 = vunpack.c.h.bf16 %v370_v34  ;;  %v435_v39 = vunpack.c.l.bf16 %v370_v34  ;;  %v438_v40 = vunpack.c.h.bf16 %v371_v38  ;;  %v372_v41 = vld [vmem:[#allocation4 + $0x18] sm:$0xff]  ;;  %v437_v42 = vunpack.c.l.bf16 %v371_v38  ;;  %v373_v44 = vld [vmem:[#allocation4 + $0x20] sm:$0xff]  ;;  %v374_v47 = vld [vmem:[#allocation4 + $0x28] sm:$0xff]  ;;  %p2372_p4 = pnand %p2371_p12, %p2365_p10 }
  0xa1   : > { %829 = vmatprep.subr.mxu0 %v2445_v0  ;;  %v440_v43 = vunpack.c.h.bf16 %v372_v41  ;;  %v439_v45 = vunpack.c.l.bf16 %v372_v41  ;;  %v442_v46 = vunpack.c.h.bf16 %v373_v44  ;;  %v441_v48 = vunpack.c.l.bf16 %v373_v44  ;;  %v375_v50 = vld [vmem:[#allocation4 + $0x30] sm:$0xff]  ;;  %v376_v53 = vld [vmem:[#allocation4 + $0x38] sm:$0xff]  ;;  %v377_v56 = vld [vmem:[#allocation4 + $0x40] sm:$0xff] }
  0xa2   : > { %830 = vmatpush1.msra.mxu0 %v762_v7  ;;  %v444_v49 = vunpack.c.h.bf16 %v374_v47  ;;  %v443_v51 = vunpack.c.l.bf16 %v374_v47  ;;  %v446_v52 = vunpack.c.h.bf16 %v375_v50  ;;  %v445_v54 = vunpack.c.l.bf16 %v375_v50  ;;  %v378_v59 = vld [vmem:[#allocation4 + $0x48] sm:$0xff]  ;;  %v379_v62 = vld [vmem:[#allocation4 + $0x50] sm:$0xff]  ;;  %v380_v2 = vld [vmem:[#allocation4 + $0x58] sm:$0xff] }
  0xa3   : > { %831 = vmatprep.subr.mxu0 %v2445_v0  ;;  %v448_v55 = vunpack.c.h.bf16 %v376_v53  ;;  %v447_v57 = vunpack.c.l.bf16 %v376_v53  ;;  %v450_v58 = vunpack.c.h.bf16 %v377_v56  ;;  %v449_v60 = vunpack.c.l.bf16 %v377_v56  ;;  %v381_v5 = vld [vmem:[#allocation4 + $0x60] sm:$0xff]  ;;  %v382_v8 = vld [vmem:[#allocation4 + $0x68] sm:$0xff]  ;;  %v392_v38 = vld [vmem:[#allocation4 + $0xb8] sm:$0xff] }
  0xa4   : > { %832 = vmatpush1.msra.mxu0 %v761_v10  ;;  %v452_v61 = vunpack.c.h.bf16 %v378_v59  ;;  %v451_v63 = vunpack.c.l.bf16 %v378_v59  ;;  %v454_v1 = vunpack.c.h.bf16 %v379_v62  ;;  %v453_v3 = vunpack.c.l.bf16 %v379_v62  ;;  %v393_v41 = vld [vmem:[#allocation4 + $0xc0] sm:$0xff]  ;;  %v394_v44 = vld [vmem:[#allocation4 + $0xc8] sm:$0xff]  ;;  %v395_v47 = vld [vmem:[#allocation4 + $0xd0] sm:$0xff] }
  0xa5   : > { %833 = vmatprep.subr.mxu0 %v2445_v0  ;;  %v456_v4 = vunpack.c.h.bf16 %v380_v2  ;;  %v455_v6 = vunpack.c.l.bf16 %v380_v2  ;;  %v458_v7 = vunpack.c.h.bf16 %v381_v5  ;;  %v457_v9 = vunpack.c.l.bf16 %v381_v5  ;;  %v396_v50 = vld [vmem:[#allocation4 + $0xd8] sm:$0xff]  ;;  %v397_v53 = vld [vmem:[#allocation4 + $0xe0] sm:$0xff]  ;;  %v398_v56 = vld [vmem:[#allocation4 + $0xe8] sm:$0xff] }
  0xa6   : > { %834 = vmatpush1.msra.mxu0 %v760_v11  ;;  %v460_v10 = vunpack.c.h.bf16 %v382_v8  ;;  %v383_v11 = vld [vmem:[#allocation4 + $0x70] sm:$0xff]  ;;  %v400_v62 = vld [vmem:[#allocation4 + $0xf8] sm:$0xff]  ;;  %v401_v2 = vld [vmem:[#allocation4 + $0x100] sm:$0xff] }
  0xa7   : > { %835 = vmatprep.subr.mxu0 %v2445_v0  ;;  %v399_v59 = vld [vmem:[#allocation4 + $0xf0] sm:$0xff]  ;;  %v402_v5 = vld [vmem:[#allocation4 + $0x108] sm:$0xff] }
  0xa8   : > { %836 = vmatpush1.msra.mxu0 %v759_v12  ;;  %v459_v12 = vunpack.c.l.bf16 %v382_v8  ;;  %v403_v8 = vld [vmem:[#allocation4 + $0x110] sm:$0xff] }
  0xa9   : > { %837 = vmatprep.subr.mxu0 %v2445_v0 }
  0xaa   : > { %838 = vmatpush1.msra.mxu0 %v758_v13  ;;  %v462_v13 = vunpack.c.h.bf16 %v383_v11 }
  0xab   : > { %839 = vmatprep.subr.mxu0 %v2445_v0 }
  0xac   : > { %840 = vmatpush1.msra.mxu0 %v757_v14  ;;  %v384_v14 = vld [vmem:[#allocation4 + $0x78] sm:$0xff] }
  0xad   : > { %841 = vmatprep.subr.mxu0 %v2445_v0 }
  0xae   : > { %842 = vmatpush1.msra.mxu0 %v756_v15  ;;  %v461_v15 = vunpack.c.l.bf16 %v383_v11  ;;  %v404_v11 = vld [vmem:[#allocation4 + $0x118] sm:$0xff] }
  0xaf   : > { %843 = vmatprep.subr.mxu0 %v2445_v0 }
  0xb0   : > { %844 = vmatpush1.msra.mxu0 %v755_v16  ;;  %v464_v16 = vunpack.c.h.bf16 %v384_v14 }
  0xb1   : > { %845 = vmatprep.subr.mxu0 %v2445_v0 }
  0xb2   : > { %846 = vmatpush1.msra.mxu0 %v754_v17  ;;  %v385_v17 = vld [vmem:[#allocation4 + $0x80] sm:$0xff] }
  0xb3   : > { %847 = vmatprep.subr.mxu0 %v2445_v0 }
  0xb4   : > { %848 = vmatpush1.msra.mxu0 %v753_v18  ;;  %v463_v18 = vunpack.c.l.bf16 %v384_v14  ;;  %v405_v14 = vld [vmem:[#allocation4 + $0x120] sm:$0xff] }
  0xb5   : > { %849 = vmatprep.subr.mxu0 %v2445_v0 }
  0xb6   : > { %850 = vmatpush2.msra.mxu0 %v784_v19  ;;  %v466_v19 = vunpack.c.h.bf16 %v385_v17 }
  0xb7   : > { %851 = vmatprep.subr.mxu0 %v2445_v0 }
  0xb8   : > { %852 = vmatpush2.msra.mxu0 %v783_v20  ;;  %v386_v20 = vld [vmem:[#allocation4 + $0x88] sm:$0xff] }
  0xb9   : > { %853 = vmatprep.subr.mxu0 %v2445_v0 }
  0xba   : > { %854 = vmatpush2.msra.mxu0 %v782_v21  ;;  %v465_v21 = vunpack.c.l.bf16 %v385_v17  ;;  %v406_v17 = vld [vmem:[#allocation4 + $0x128] sm:$0xff] }
  0xbb   : > { %855 = vmatprep.subr.mxu0 %v2445_v0 }
  0xbc   : > { %856 = vmatpush2.msra.mxu0 %v781_v22  ;;  %v468_v22 = vunpack.c.h.bf16 %v386_v20 }
  0xbd   : > { %857 = vmatprep.subr.mxu0 %v2445_v0 }
  0xbe   : > { %858 = vmatpush2.msra.mxu0 %v780_v23  ;;  %v387_v23 = vld [vmem:[#allocation4 + $0x90] sm:$0xff] }
  0xbf   : > { %859 = vmatprep.subr.mxu0 %v2445_v0 }
  0xc0   : > { %860 = vmatpush2.msra.mxu0 %v779_v24  ;;  %v467_v24 = vunpack.c.l.bf16 %v386_v20  ;;  %v407_v20 = vld [vmem:[#allocation4 + $0x130] sm:$0xff] }
  0xc1   : > { %861 = vmatprep.subr.mxu0 %v2445_v0 }
  0xc2   : > { %862 = vmatpush2.msra.mxu0 %v778_v25  ;;  %v470_v25 = vunpack.c.h.bf16 %v387_v23 }
  0xc3   : > { %863 = vmatprep.subr.mxu0 %v2445_v0 }
  0xc4   : > { %864 = vmatpush2.msra.mxu0 %v777_v26  ;;  %v388_v26 = vld [vmem:[#allocation4 + $0x98] sm:$0xff] }
  0xc5   : > { %865 = vmatprep.subr.mxu0 %v2445_v0 }
  0xc6   : > { %866 = vmatpush2.msra.mxu0 %v776_v27  ;;  %v469_v27 = vunpack.c.l.bf16 %v387_v23  ;;  %v408_v23 = vld [vmem:[#allocation4 + $0x138] sm:$0xff] }
  0xc7   : > { %867 = vmatprep.subr.mxu0 %v2445_v0 }
  0xc8   : > { %868 = vmatpush2.msra.mxu0 %v775_v28  ;;  %v472_v28 = vunpack.c.h.bf16 %v388_v26 }
  0xc9   : > { %869 = vmatprep.subr.mxu0 %v2445_v0 }
  0xca   : > { %870 = vmatpush2.msra.mxu0 %v774_v29  ;;  %v389_v29 = vld [vmem:[#allocation4 + $0xa0] sm:$0xff] }
  0xcb   : > { %871 = vmatprep.subr.mxu0 %v2445_v0 }
  0xcc   : > { %872 = vmatpush2.msra.mxu0 %v773_v30  ;;  %v471_v30 = vunpack.c.l.bf16 %v388_v26  ;;  %v409_v26 = vld [vmem:[#allocation4 + $0x140] sm:$0xff] }
  0xcd   : > { %873 = vmatprep.subr.mxu0 %v2445_v0 }
  0xce   : > { %874 = vmatpush2.msra.mxu0 %v772_v31  ;;  %v474_v31 = vunpack.c.h.bf16 %v389_v29 }
  0xcf   : > { %875 = vmatprep.subr.mxu0 %v2445_v0 }
  0xd0   : > { %876 = vmatpush2.msra.mxu0 %v771_v32  ;;  %v390_v32 = vld [vmem:[#allocation4 + $0xa8] sm:$0xff] }
  0xd1   : > { %877 = vmatprep.subr.mxu0 %v2445_v0  ;;  %v476_v34 = vunpack.c.h.bf16 %v390_v32 }
  0xd2   : > { %878 = vmatpush2.msra.mxu0 %v770_v33  ;;  %v473_v33 = vunpack.c.l.bf16 %v389_v29  ;;  %v410_v29 = vld [vmem:[#allocation4 + $0x148] sm:$0xff] }
  0xd3   : > { %879 = vmatprep.subr.mxu0 %v2445_v0 }
  0xd4   : > { %880 = vmatpush2.msra.mxu0 %v769_v35  ;;  %v391_v35 = vld [vmem:[#allocation4 + $0xb0] sm:$0xff] }
  0xd5   : > { %882 = vmatmul.mubr.f32.vlgmr.msra.gmra.mxu0 %v433_v36  ;;  %v475_v36 = vunpack.c.l.bf16 %v390_v32  ;;  %v411_v32 = vld [vmem:[#allocation4 + $0x150] sm:$0xff] }
  0xd6   : > { %886 = vmatprep.mubr.f32.mxu0 %v436_v37  ;;  %v478_v37 = vunpack.c.h.bf16 %v391_v35 }
  0xd9   : > { %887 = vmatmul.mubr.f32.gmra.mxu0 %v435_v39  ;;  %v477_v39 = vunpack.c.l.bf16 %v391_v35  ;;  %v412_v35 = vld [vmem:[#allocation4 + $0x158] sm:$0xff] }
  0xda   : > { %891 = vmatprep.mubr.f32.mxu0 %v438_v40  ;;  %v480_v40 = vunpack.c.h.bf16 %v392_v38 }
  0xdd   : > { %892 = vmatmul.mubr.f32.gmra.mxu0 %v437_v42  ;;  %v479_v42 = vunpack.c.l.bf16 %v392_v38  ;;  %v413_v38 = vld [vmem:[#allocation4 + $0x160] sm:$0xff] }
  0xde   : > { %896 = vmatprep.mubr.f32.mxu0 %v440_v43  ;;  %v482_v43 = vunpack.c.h.bf16 %v393_v41 }
  0xe1   : > { %897 = vmatmul.mubr.f32.gmra.mxu0 %v439_v45  ;;  %v481_v45 = vunpack.c.l.bf16 %v393_v41  ;;  %v414_v41 = vld [vmem:[#allocation4 + $0x168] sm:$0xff] }
  0xe2   : > { %901 = vmatprep.mubr.f32.mxu0 %v442_v46  ;;  %v484_v46 = vunpack.c.h.bf16 %v394_v44 }
  0xe5   : > { %902 = vmatmul.mubr.f32.gmra.mxu0 %v441_v48  ;;  %v483_v48 = vunpack.c.l.bf16 %v394_v44  ;;  %v415_v44 = vld [vmem:[#allocation4 + $0x170] sm:$0xff] }
  0xe6   : > { %906 = vmatprep.mubr.f32.mxu0 %v444_v49  ;;  %v486_v49 = vunpack.c.h.bf16 %v395_v47 }
  0xe9   : > { %907 = vmatmul.mubr.f32.gmra.mxu0 %v443_v51  ;;  %v485_v51 = vunpack.c.l.bf16 %v395_v47  ;;  %v416_v47 = vld [vmem:[#allocation4 + $0x178] sm:$0xff] }
  0xea   : > { %911 = vmatprep.mubr.f32.mxu0 %v446_v52  ;;  %v488_v52 = vunpack.c.h.bf16 %v396_v50 }
  0xed   : > { %912 = vmatmul.mubr.f32.gmra.mxu0 %v445_v54  ;;  %v487_v54 = vunpack.c.l.bf16 %v396_v50  ;;  %v417_v50 = vld [vmem:[#allocation4 + $0x180] sm:$0xff] }
  0xee   : > { %916 = vmatprep.mubr.f32.mxu0 %v448_v55  ;;  %v490_v55 = vunpack.c.h.bf16 %v397_v53 }
  0xf1   : > { %917 = vmatmul.mubr.f32.gmra.mxu0 %v447_v57  ;;  %v489_v57 = vunpack.c.l.bf16 %v397_v53  ;;  %v418_v53 = vld [vmem:[#allocation4 + $0x188] sm:$0xff] }
  0xf2   : > { %921 = vmatprep.mubr.f32.mxu0 %v450_v58  ;;  %v492_v58 = vunpack.c.h.bf16 %v398_v56 }
  0xf5   : > { %922 = vmatmul.mubr.f32.gmra.mxu0 %v449_v60  ;;  %v491_v60 = vunpack.c.l.bf16 %v398_v56  ;;  %v419_v56 = vld [vmem:[#allocation4 + $0x190] sm:$0xff] }
  0xf6   : > { %926 = vmatprep.mubr.f32.mxu0 %v452_v61  ;;  %v494_v61 = vunpack.c.h.bf16 %v399_v59 }
  0xf9   : > { %927 = vmatmul.mubr.f32.gmra.mxu0 %v451_v63  ;;  %v493_v63 = vunpack.c.l.bf16 %v399_v59  ;;  %v534_v59 = vunpack.c.h.bf16 %v419_v56 }
  0xfa   : > { %931 = vmatprep.mubr.f32.mxu0 %v454_v1  ;;  %v496_v1 = vunpack.c.h.bf16 %v400_v62 }
  0xfd   : > { %932 = vmatmul.mubr.f32.gmra.mxu0 %v453_v3  ;;  %v495_v3 = vunpack.c.l.bf16 %v400_v62 }
  0xfe   : > { %936 = vmatprep.mubr.f32.mxu0 %v456_v4  ;;  %v498_v4 = vunpack.c.h.bf16 %v401_v2 }
 0x101   : > { %937 = vmatmul.mubr.f32.gmra.mxu0 %v455_v6  ;;  %v497_v6 = vunpack.c.l.bf16 %v401_v2 }
 0x102   : > { %941 = vmatprep.mubr.f32.mxu0 %v458_v7  ;;  %v500_v7 = vunpack.c.h.bf16 %v402_v5 }
 0x105   : > { %942 = vmatmul.mubr.f32.gmra.mxu0 %v457_v9  ;;  %v499_v9 = vunpack.c.l.bf16 %v402_v5 }
 0x106   : > { %946 = vmatprep.mubr.f32.mxu0 %v460_v10  ;;  %v502_v10 = vunpack.c.h.bf16 %v403_v8 }
 0x109   : > { %947 = vmatmul.mubr.f32.gmra.mxu0 %v459_v12  ;;  %v501_v12 = vunpack.c.l.bf16 %v403_v8  ;;  %v422_v8 = vld [vmem:[#allocation4 + $0x1a8] sm:$0xff] }
 0x10a   : > { %951 = vmatprep.mubr.f32.mxu0 %v462_v13  ;;  %v504_v13 = vunpack.c.h.bf16 %v404_v11 }
 0x10d   : > { %952 = vmatmul.mubr.f32.gmra.mxu0 %v461_v15  ;;  %v503_v15 = vunpack.c.l.bf16 %v404_v11  ;;  %v540_v11 = vunpack.c.h.bf16 %v422_v8 }
 0x10e   : > { %956 = vmatprep.mubr.f32.mxu0 %v464_v16  ;;  %v506_v16 = vunpack.c.h.bf16 %v405_v14 }
 0x111   : > { %957 = vmatmul.mubr.f32.gmra.mxu0 %v463_v18  ;;  %v505_v18 = vunpack.c.l.bf16 %v405_v14 }
 0x112   : > { %961 = vmatprep.mubr.f32.mxu0 %v466_v19  ;;  %v508_v19 = vunpack.c.h.bf16 %v406_v17 }
 0x115   : > { %962 = vmatmul.mubr.f32.gmra.mxu0 %v465_v21  ;;  %v507_v21 = vunpack.c.l.bf16 %v406_v17 }
 0x116   : > { %966 = vmatprep.mubr.f32.mxu0 %v468_v22  ;;  %v510_v22 = vunpack.c.h.bf16 %v407_v20 }
 0x119   : > { %967 = vmatmul.mubr.f32.gmra.mxu0 %v467_v24  ;;  %v509_v24 = vunpack.c.l.bf16 %v407_v20 }
 0x11a   : > { %971 = vmatprep.mubr.f32.mxu0 %v470_v25  ;;  %v512_v25 = vunpack.c.h.bf16 %v408_v23 }
 0x11d   : > { %972 = vmatmul.mubr.f32.gmra.mxu0 %v469_v27  ;;  %v511_v27 = vunpack.c.l.bf16 %v408_v23  ;;  %v425_v23 = vld [vmem:[#allocation4 + $0x1c0] sm:$0xff] }
 0x11e   : > { %976 = vmatprep.mubr.f32.mxu0 %v472_v28  ;;  %v514_v28 = vunpack.c.h.bf16 %v409_v26 }
 0x121   : > { %977 = vmatmul.mubr.f32.gmra.mxu0 %v471_v30  ;;  %v513_v30 = vunpack.c.l.bf16 %v409_v26  ;;  %v546_v26 = vunpack.c.h.bf16 %v425_v23 }
 0x122   : > { %981 = vmatprep.mubr.f32.mxu0 %v474_v31  ;;  %v516_v31 = vunpack.c.h.bf16 %v410_v29 }
 0x125   : > { %982 = vmatmul.mubr.f32.gmra.mxu0 %v473_v33  ;;  %v515_v33 = vunpack.c.l.bf16 %v410_v29  ;;  %v2810_v29 = vld [vmem:[#allocation7] sm:$0xff] }
 0x126   : > { %986 = vmatprep.mubr.f32.mxu0 %v476_v34  ;;  %v518_v34 = vunpack.c.h.bf16 %v411_v32 }
 0x129   : > { %987 = vmatmul.mubr.f32.gmra.mxu0 %v475_v36  ;;  %v517_v36 = vunpack.c.l.bf16 %v411_v32  ;;  %v545_v32 = vunpack.c.l.bf16 %v425_v23 }
 0x12a   : > { %991 = vmatprep.mubr.f32.mxu0 %v478_v37  ;;  %v520_v37 = vunpack.c.h.bf16 %v412_v35 }
 0x12d   : > { %992 = vmatmul.mubr.f32.gmra.mxu0 %v477_v39  ;;  %v519_v39 = vunpack.c.l.bf16 %v412_v35  ;;  %v427_v35 = vld [vmem:[#allocation4 + $0x1d0] sm:$0xff] }
 0x12e   : > { %996 = vmatprep.mubr.f32.mxu0 %v480_v40  ;;  %v522_v40 = vunpack.c.h.bf16 %v413_v38 }
 0x131   : > { %997 = vmatmul.mubr.f32.gmra.mxu0 %v479_v42  ;;  %v521_v42 = vunpack.c.l.bf16 %v413_v38  ;;  %v550_v38 = vunpack.c.h.bf16 %v427_v35 }
 0x132   : > { %1001 = vmatprep.mubr.f32.mxu0 %v482_v43  ;;  %v524_v43 = vunpack.c.h.bf16 %v414_v41 }
 0x135   : > { %1002 = vmatmul.mubr.f32.gmra.mxu0 %v481_v45  ;;  %v523_v45 = vunpack.c.l.bf16 %v414_v41 }
 0x136   : > { %1006 = vmatprep.mubr.f32.mxu0 %v484_v46  ;;  %v526_v46 = vunpack.c.h.bf16 %v415_v44 }
 0x139   : > { %1007 = vmatmul.mubr.f32.gmra.mxu0 %v483_v48  ;;  %v525_v48 = vunpack.c.l.bf16 %v415_v44 }
 0x13a   : > { %1011 = vmatprep.mubr.f32.mxu0 %v486_v49  ;;  %v528_v49 = vunpack.c.h.bf16 %v416_v47 }
 0x13d   : > { %1012 = vmatmul.mubr.f32.gmra.mxu0 %v485_v51  ;;  %v527_v51 = vunpack.c.l.bf16 %v416_v47 }
 0x13e   : > { %1016 = vmatprep.mubr.f32.mxu0 %v488_v52  ;;  %v530_v52 = vunpack.c.h.bf16 %v417_v50 }
 0x141   : > { %1017 = vmatmul.mubr.f32.gmra.mxu0 %v487_v54  ;;  %v529_v54 = vunpack.c.l.bf16 %v417_v50  ;;  %v430_v50 = vld [vmem:[#allocation4 + $0x1e8] sm:$0xff] }
 0x142   : > { %1021 = vmatprep.mubr.f32.mxu0 %v490_v55  ;;  %v532_v55 = vunpack.c.h.bf16 %v418_v53 }
 0x145   : > { %1022 = vmatmul.mubr.f32.gmra.mxu0 %v489_v57 }
 0x146   : > { %1026 = vmatprep.mubr.f32.mxu0 %v492_v58  ;;  %v531_v58 = vunpack.c.l.bf16 %v418_v53  ;;  %v556_v53 = vunpack.c.h.bf16 %v430_v50 }
 0x149   : > { %1027 = vmatmul.mubr.f32.gmra.mxu0 %v491_v60 }
 0x14a   : > { %1031 = vmatprep.mubr.f32.mxu0 %v494_v61  ;;  %v420_v61 = vld [vmem:[#allocation4 + $0x198] sm:$0xff] }
 0x14b   : > { %v535_v5 = vunpack.c.l.bf16 %v420_v61 }
 0x14d   : > { %1032 = vmatmul.mubr.f32.gmra.mxu0 %v493_v63  ;;  %v533_v63 = vunpack.c.l.bf16 %v419_v56 }
 0x14e   : > { %1036 = vmatprep.mubr.f32.mxu0 %v496_v1  ;;  %v536_v1 = vunpack.c.h.bf16 %v420_v61  ;;  %v432_v61 = vld [vmem:[#allocation4 + $0x1f8] sm:$0xff] }
 0x151   : > { %1037 = vmatmul.mubr.f32.gmra.mxu0 %v495_v3  ;;  %v421_v3 = vld [vmem:[#allocation4 + $0x1a0] sm:$0xff] }
 0x152   : > { %1041 = vmatprep.mubr.f32.mxu0 %v498_v4 }
 0x155   : > { %1042 = vmatmul.mubr.f32.gmra.mxu0 %v497_v6  ;;  %v538_v6 = vunpack.c.h.bf16 %v421_v3 }
 0x156   : > { %1046 = vmatprep.mubr.f32.mxu0 %v500_v7 }
 0x159   : > { %1047 = vmatmul.mubr.f32.gmra.mxu0 %v499_v9 }
 0x15a   : > { %1051 = vmatprep.mubr.f32.mxu0 %v502_v10  ;;  %v537_v10 = vunpack.c.l.bf16 %v421_v3 }
 0x15d   : > { %1052 = vmatmul.mubr.f32.gmra.mxu0 %v501_v12 }
 0x15e   : > { %1056 = vmatprep.mubr.f32.mxu0 %v504_v13  ;;  %v423_v13 = vld [vmem:[#allocation4 + $0x1b0] sm:$0xff] }
 0x15f   : > { %v541_v20 = vunpack.c.l.bf16 %v423_v13 }
 0x161   : > { %1057 = vmatmul.mubr.f32.gmra.mxu0 %v503_v15  ;;  %v539_v15 = vunpack.c.l.bf16 %v422_v8  ;;  %v2823_v8 = vld [vmem:[%s2820_s9 + $0x78] sm:$0xff] }
 0x162   : > { %1061 = vmatprep.mubr.f32.mxu0 %v506_v16  ;;  %v542_v16 = vunpack.c.h.bf16 %v423_v13  ;;  %v2830_v13 = vld [vmem:[%s2820_s9 + $0x68] sm:$0xff] }
 0x165   : > { %1062 = vmatmul.mubr.f32.gmra.mxu0 %v505_v18  ;;  %v424_v18 = vld [vmem:[#allocation4 + $0x1b8] sm:$0xff] }
 0x166   : > { %1066 = vmatprep.mubr.f32.mxu0 %v508_v19 }
 0x169   : > { %1067 = vmatmul.mubr.f32.gmra.mxu0 %v507_v21  ;;  %v544_v21 = vunpack.c.h.bf16 %v424_v18 }
 0x16a   : > { %1071 = vmatprep.mubr.f32.mxu0 %v510_v22 }
 0x16d   : > { %1072 = vmatmul.mubr.f32.gmra.mxu0 %v509_v24 }
 0x16e   : > { %1076 = vmatprep.mubr.f32.mxu0 %v512_v25  ;;  %v543_v25 = vunpack.c.l.bf16 %v424_v18 }
 0x171   : > { %1077 = vmatmul.mubr.f32.gmra.mxu0 %v511_v27 }
 0x172   : > { %1081 = vmatprep.mubr.f32.mxu0 %v514_v28  ;;  %v426_v28 = vld [vmem:[#allocation4 + $0x1c8] sm:$0xff] }
 0x175   : > { %1082 = vmatmul.mubr.f32.gmra.mxu0 %v513_v30  ;;  %v626_v30 = vunpack.c.h.bf16 %v2810_v29 }
 0x176   : > { %1086 = vmatprep.mubr.f32.mxu0 %v516_v31 }
 0x177   : > { %1460 = vmatprep.mubr.f32.mxu1 %v626_v30 }
 0x179   : > { %1087 = vmatmul.mubr.f32.gmra.mxu0 %v515_v33  ;;  %v548_v33 = vunpack.c.h.bf16 %v426_v28 }
 0x17a   : > { %1091 = vmatprep.mubr.f32.mxu0 %v518_v34 }
 0x17d   : > { %1092 = vmatmul.mubr.f32.gmra.mxu0 %v517_v36 }
 0x17e   : > { %1096 = vmatprep.mubr.f32.mxu0 %v520_v37  ;;  %v547_v37 = vunpack.c.l.bf16 %v426_v28  ;;  %v2853_v28 = vld [vmem:[%s2820_s9 + $0x48] sm:$0xff] }
 0x181   : > { %1097 = vmatmul.mubr.f32.gmra.mxu0 %v519_v39 }
 0x182   : > { %1101 = vmatprep.mubr.f32.mxu0 %v522_v40  ;;  %v428_v40 = vld [vmem:[#allocation4 + $0x1d8] sm:$0xff] }
 0x183   : > { %v551_v47 = vunpack.c.l.bf16 %v428_v40 }
 0x185   : > { %1102 = vmatmul.mubr.f32.gmra.mxu0 %v521_v42  ;;  %v549_v42 = vunpack.c.l.bf16 %v427_v35 }
 0x186   : > { %1106 = vmatprep.mubr.f32.mxu0 %v524_v43  ;;  %v552_v43 = vunpack.c.h.bf16 %v428_v40  ;;  %v2872_v40 = vld [vmem:[%s2820_s9 + $0x30] sm:$0xff] }
 0x189   : > { %1107 = vmatmul.mubr.f32.gmra.mxu0 %v523_v45  ;;  %v429_v45 = vld [vmem:[#allocation4 + $0x1e0] sm:$0xff] }
 0x18a   : > { %1111 = vmatprep.mubr.f32.mxu0 %v526_v46 }
 0x18d   : > { %1112 = vmatmul.mubr.f32.gmra.mxu0 %v525_v48  ;;  %v554_v48 = vunpack.c.h.bf16 %v429_v45 }
 0x18e   : > { %1116 = vmatprep.mubr.f32.mxu0 %v528_v49 }
 0x191   : > { %1117 = vmatmul.mubr.f32.gmra.mxu0 %v527_v51 }
 0x192   : > { %1121 = vmatprep.mubr.f32.mxu0 %v530_v52  ;;  %v553_v52 = vunpack.c.l.bf16 %v429_v45  ;;  %v2886_v45 = vld [vmem:[%s2820_s9 + $0x20] sm:$0xff] }
 0x195   : > { %v2796_v57 = vpop.f32.mrf.mxu0  ;;  %1122 = vmatmul.mubr.f32.gmra.mxu0 %v529_v54 }
 0x196   : > { %1126 = vmatprep.mubr.f32.mxu0 %v532_v55  ;;  %v431_v55 = vld [vmem:[#allocation4 + $0x1f0] sm:$0xff] }
 0x197   : > { %v885_v60 = vpop.f32.mrf.mxu0 }
 0x199   : > { %v2798_v62 = vpop.f32.mrf.mxu0  ;;  %1127 = vmatmul.mubr.f32.gmra.mxu0 %v531_v58  ;;  %v555_v58 = vunpack.c.l.bf16 %v430_v50 }
 0x19a   : > { %1131 = vmatprep.mubr.f32.mxu0 %v534_v59  ;;  %v558_v59 = vunpack.c.h.bf16 %v431_v55 }
 0x19b   : > { %v890_v2 = vpop.f32.mrf.mxu0 }
 0x19c   : > { %v560_v2 = vunpack.c.h.bf16 %v432_v61 }
 0x19d   : > { %v2800_v4 = vpop.f32.mrf.mxu0  ;;  %1132 = vmatmul.mubr.f32.gmra.mxu0 %v533_v63 }
 0x19e   : > { %1136 = vmatprep.mubr.f32.mxu0 %v536_v1  ;;  %v557_v1 = vunpack.c.l.bf16 %v431_v55 }
 0x19f   : > { %v895_v7 = vpop.f32.mrf.mxu0 }
 0x1a1   : > { %v2802_v9 = vpop.f32.mrf.mxu0  ;;  %1137 = vmatmul.mubr.f32.gmra.mxu0 %v535_v5 }
 0x1a2   : > { %1141 = vmatprep.mubr.f32.mxu0 %v538_v6  ;;  %v559_v6 = vunpack.c.l.bf16 %v432_v61 }
 0x1a3   : > { %v900_v12 = vpop.f32.mrf.mxu0 }
 0x1a5   : > { %v2804_v14 = vpop.f32.mrf.mxu0  ;;  %1142 = vmatmul.mubr.f32.gmra.mxu0 %v537_v10  ;;  %v2826_v10 = vld [vmem:[%s2820_s9 + $0x70] sm:$0xff] }
 0x1a6   : > { %1146 = vmatprep.mubr.f32.mxu0 %v540_v11 }
 0x1a7   : > { %v905_v17 = vpop.f32.mrf.mxu0 }
 0x1a8   : > { %v2834_v17 = vld [vmem:[%s2820_s9 + $0x60] sm:$0xff] }
 0x1a9   : > { %v2806_v19 = vpop.f32.mrf.mxu0  ;;  %1147 = vmatmul.mubr.f32.gmra.mxu0 %v539_v15 }
 0x1aa   : > { %1151 = vmatprep.mubr.f32.mxu0 %v542_v16 }
 0x1ab   : > { %v910_v22 = vpop.f32.mrf.mxu0 }
 0x1ad   : > { %v2808_v24 = vpop.f32.mrf.mxu0  ;;  %1152 = vmatmul.mubr.f32.gmra.mxu0 %v541_v20 }
 0x1ae   : > { %1156 = vmatprep.mubr.f32.mxu0 %v544_v21  ;;  %v2841_v21 = vld [vmem:[%s2820_s9 + $0x58] sm:$0xff] }
 0x1af   : > { %v915_v27 = vpop.f32.mrf.mxu0 }
 0x1b1   : > { %v2813_v31 = vpop.f32.mrf.mxu0  ;;  %1157 = vmatmul.mubr.f32.gmra.mxu0 %v543_v25  ;;  %v2846_v25 = vld [vmem:[%s2820_s9 + $0x50] sm:$0xff] }
 0x1b2   : > { %1161 = vmatprep.mubr.f32.mxu0 %v546_v26 }
 0x1b3   : > { %v920_v34 = vpop.f32.mrf.mxu0 }
 0x1b5   : > { %v2815_v36 = vpop.f32.mrf.mxu0  ;;  %1162 = vmatmul.mubr.f32.gmra.mxu0 %v545_v32 }
 0x1b6   : > { %1166 = vmatprep.mubr.f32.mxu0 %v548_v33  ;;  %v2858_v33 = vld [vmem:[%s2820_s9 + $0x40] sm:$0xff] }
 0x1b7   : > { %v925_v39 = vpop.f32.mrf.mxu0 }
 0x1b8   : > { %v1210_v39 = vmul.f32 %v2815_v36, %v2858_v33  ;;  %v1208_v36 = vmul.f32 %v2808_v24, %v2872_v40  ;;  %v1206_v24 = vmul.f32 %v2804_v14, %v2886_v45  ;;  %v2914_v14 = vld [vmem:[%s2820_s9] sm:$0xff] }
 0x1b9   : > { %v2817_v41 = vpop.f32.mrf.mxu0  ;;  %1167 = vmatmul.mubr.f32.gmra.mxu0 %v547_v37  ;;  %v2866_v37 = vld [vmem:[%s2820_s9 + $0x38] sm:$0xff] }
 0x1ba   : > { %1171 = vmatprep.mubr.f32.mxu0 %v550_v38  ;;  %v1211_v35 = vmul.f32 %v2817_v41, %v2853_v28  ;;  %v1209_v41 = vmul.f32 %v2813_v31, %v2866_v37 }
 0x1bb   : > { %v930_v44 = vpop.f32.mrf.mxu0 }
 0x1bd   : > { %v933_v46 = vpop.f32.mrf.mxu0  ;;  %1172 = vmatmul.mubr.f32.gmra.mxu0 %v549_v42 }
 0x1be   : > { %1176 = vmatprep.mubr.f32.mxu0 %v552_v43  ;;  %v1212_v32 = vmul.f32 %v933_v46, %v2846_v25  ;;  %v2880_v43 = vld [vmem:[%s2820_s9 + $0x28] sm:$0xff] }
 0x1bf   : > { %v935_v49 = vpop.f32.mrf.mxu0  ;;  %v1207_v31 = vmul.f32 %v2806_v19, %v2880_v43 }
 0x1c0   : > { %v2900_v49 = vld [vmem:[%s2820_s9 + $0x10] sm:$0xff] }
 0x1c1   : > { %v938_v51 = vpop.f32.mrf.mxu0  ;;  %1177 = vmatmul.mubr.f32.gmra.mxu0 %v551_v47  ;;  %v2894_v47 = vld [vmem:[%s2820_s9 + $0x18] sm:$0xff] }
 0x1c2   : > { %1181 = vmatprep.mubr.f32.mxu0 %v554_v48  ;;  %v1213_v27 = vmul.f32 %v938_v51, %v2841_v21  ;;  %v1205_v19 = vmul.f32 %v2802_v9, %v2894_v47  ;;  %v2908_v51 = vld [vmem:[%s2820_s9 + $0x8] sm:$0xff] }
 0x1c3   : > { %v940_v54 = vpop.f32.mrf.mxu0  ;;  %v1203_v55 = vmul.f32 %v2798_v62, %v2908_v51 }
 0x1c5   : > { %v943_v56 = vpop.f32.mrf.mxu0  ;;  %1182 = vmatmul.mubr.f32.gmra.mxu0 %v553_v52 }
 0x1c6   : > { %1186 = vmatprep.mubr.f32.mxu0 %v556_v53  ;;  %v1214_v23 = vmul.f32 %v943_v56, %v2834_v17  ;;  %v1204_v53 = vmul.f32 %v2800_v4, %v2900_v49  ;;  %v1202_v56 = vmul.f32 %v2796_v57, %v2914_v14 }
 0x1c7   : > { %v945_v60 = vpop.f32.mrf.mxu0 }
 0x1c9   : > { %v948_v63 = vpop.f32.mrf.mxu0  ;;  %1187 = vmatmul.mubr.f32.gmra.mxu0 %v555_v58 }
 0x1ca   : > { %1191 = vmatprep.mubr.f32.mxu0 %v558_v59  ;;  %v1215_v20 = vmul.f32 %v948_v63, %v2830_v13 }
 0x1cb   : > { %v950_v3 = vpop.f32.mrf.mxu0 }
 0x1cd   : > { %v953_v5 = vpop.f32.mrf.mxu0  ;;  %1192 = vmatmul.mubr.f32.gmra.mxu0 %v557_v1 }
 0x1ce   : > { %1196 = vmatprep.mubr.f32.mxu0 %v560_v2  ;;  %v1216_v16 = vmul.f32 %v953_v5, %v2826_v10 }
 0x1cf   : > { %v955_v7 = vpop.f32.mrf.mxu0 }
 0x1d1   : > { %v958_v11 = vpop.f32.mrf.mxu0  ;;  %1197 = vmatmul.mubr.f32.gmra.mxu0 %v559_v6 }
 0x1d2   : > { %v1217_v12 = vmul.f32 %v958_v11, %v2823_v8 }
 0x1d3   : > { %v960_v15 = vpop.f32.mrf.mxu0 }
 0x1d4   : > { %1397 = vmatpush1.msra.mxu1 %v1217_v12  ;;  %v2927_v15 = vld [vmem:[%s2820_s9 + $0xf8] sm:$0xff] }
 0x1d5   : > { %v2836_v18 = vpop.f32.mrf.mxu0  ;;  %1398 = vmatprep.subr.mxu1 %v2445_v0 }
 0x1d6   : > { %1399 = vmatpush1.msra.mxu1 %v1216_v16  ;;  %v2930_v16 = vld [vmem:[%s2820_s9 + $0xf0] sm:$0xff] }
 0x1d7   : > { %v965_v22 = vpop.f32.mrf.mxu0  ;;  %1400 = vmatprep.subr.mxu1 %v2445_v0 }
 0x1d8   : > { %1401 = vmatpush1.msra.mxu1 %v1215_v20 }
 0x1d9   : > { %v2848_v26 = vpop.f32.mrf.mxu0  ;;  %1402 = vmatprep.subr.mxu1 %v2445_v0 }
 0x1da   : > { %1403 = vmatpush1.msra.mxu1 %v1214_v23  ;;  %v2934_v23 = vld [vmem:[%s2820_s9 + $0xe8] sm:$0xff] }
 0x1db   : > { %v970_v30 = vpop.f32.mrf.mxu0  ;;  %1404 = vmatprep.subr.mxu1 %v2445_v0 }
 0x1dc   : > { %1405 = vmatpush1.msra.mxu1 %v1213_v27 }
 0x1dd   : > { %v2860_v34 = vpop.f32.mrf.mxu0  ;;  %1406 = vmatprep.subr.mxu1 %v2445_v0 }
 0x1de   : > { %1407 = vmatpush1.msra.mxu1 %v1212_v32  ;;  %v2938_v32 = vld [vmem:[%s2820_s9 + $0xe0] sm:$0xff] }
 0x1df   : > { %v975_v38 = vpop.f32.mrf.mxu0  ;;  %1408 = vmatprep.subr.mxu1 %v2445_v0 }
 0x1e0   : > { %1409 = vmatpush1.msra.mxu1 %v1211_v35 }
 0x1e1   : > { %v2874_v42 = vpop.f32.mrf.mxu0  ;;  %1410 = vmatprep.subr.mxu1 %v2445_v0 }
 0x1e2   : > { %1411 = vmatpush1.msra.mxu1 %v1210_v39  ;;  %v2945_v39 = vld [vmem:[%s2820_s9 + $0xd8] sm:$0xff] }
 0x1e3   : > { %v980_v44 = vpop.f32.mrf.mxu0  ;;  %1412 = vmatprep.subr.mxu1 %v2445_v0 }
 0x1e4   : > { %1413 = vmatpush1.msra.mxu1 %v1209_v41 }
 0x1e5   : > { %v2888_v46 = vpop.f32.mrf.mxu0  ;;  %1414 = vmatprep.subr.mxu1 %v2445_v0 }
 0x1e6   : > { %1415 = vmatpush1.msra.mxu1 %v1208_v36  ;;  %v2950_v36 = vld [vmem:[%s2820_s9 + $0xd0] sm:$0xff] }
 0x1e7   : > { %v985_v48 = vpop.f32.mrf.mxu0  ;;  %1416 = vmatprep.subr.mxu1 %v2445_v0 }
 0x1e8   : > { %1417 = vmatpush1.msra.mxu1 %v1207_v31 }
 0x1e9   : > { %v2902_v50 = vpop.f32.mrf.mxu0  ;;  %1418 = vmatprep.subr.mxu1 %v2445_v0 }
 0x1ea   : > { %1419 = vmatpush1.msra.mxu1 %v1206_v24  ;;  %v2957_v24 = vld [vmem:[%s2820_s9 + $0xc8] sm:$0xff] }
 0x1eb   : > { %v990_v52 = vpop.f32.mrf.mxu0  ;;  %1420 = vmatprep.subr.mxu1 %v2445_v0 }
 0x1ec   : > { %1421 = vmatpush1.msra.mxu1 %v1205_v19 }
 0x1ed   : > { %v2916_v54 = vpop.f32.mrf.mxu0  ;;  %1422 = vmatprep.subr.mxu1 %v2445_v0 }
 0x1ee   : > { %1423 = vmatpush1.msra.mxu1 %v1204_v53  ;;  %v2962_v53 = vld [vmem:[%s2820_s9 + $0xc0] sm:$0xff] }
 0x1ef   : > { %v995_v9 = vpop.f32.mrf.mxu0  ;;  %1424 = vmatprep.subr.mxu1 %v2445_v0 }
 0x1f0   : > { %1425 = vmatpush1.msra.mxu1 %v1203_v55 }
 0x1f1   : > { %v998_v58 = vpop.f32.mrf.mxu0  ;;  %1426 = vmatprep.subr.mxu1 %v2445_v0 }
 0x1f2   : > { %1427 = vmatpush1.msra.mxu1 %v1202_v56  ;;  %v2969_v56 = vld [vmem:[%s2820_s9 + $0xb8] sm:$0xff] }
 0x1f3   : > { %v1000_v4 = vpop.f32.mrf.mxu0  ;;  %1428 = vmatprep.subr.mxu1 %v2445_v0 }
 0x1f5   : > { %v1003_v59 = vpop.f32.mrf.mxu0 }
 0x1f7   : > { %v1005_v60 = vpop.f32.mrf.mxu0 }
 0x1f8   : > { %v1226_v60 = vmul.f32 %v1003_v59, %v2962_v53 }
 0x1f9   : > { %v1008_v62 = vpop.f32.mrf.mxu0 }
 0x1fa   : > { %v1227_v9 = vmul.f32 %v1008_v62, %v2957_v24  ;;  %v2981_v62 = vld [vmem:[%s2820_s9 + $0xa8] sm:$0xff] }
 0x1fb   : > { %v1010_v61 = vpop.f32.mrf.mxu0 }
 0x1fc   : > { %v2974_v61 = vld [vmem:[%s2820_s9 + $0xb0] sm:$0xff] }
 0x1fd   : > { %v1013_v63 = vpop.f32.mrf.mxu0  ;;  %v1224_v59 = vmul.f32 %v2916_v54, %v2974_v61 }
 0x1fe   : > { %v1228_v52 = vmul.f32 %v1013_v63, %v2950_v36 }
 0x1ff   : > { %v1015_v1 = vpop.f32.mrf.mxu0 }
 0x200   : > { %v1225_v1 = vmul.f32 %v998_v58, %v2969_v56  ;;  %v1223_v58 = vmul.f32 %v2902_v50, %v2981_v62 }
 0x201   : > { %v1018_v2 = vpop.f32.mrf.mxu0 }
 0x202   : > { %v1229_v48 = vmul.f32 %v1018_v2, %v2945_v39 }
 0x203   : > { %v1020_v57 = vpop.f32.mrf.mxu0 }
 0x204   : > { %v2987_v57 = vld [vmem:[%s2820_s9 + $0xa0] sm:$0xff] }
 0x205   : > { %v1023_v3 = vpop.f32.mrf.mxu0  ;;  %v1222_v54 = vmul.f32 %v2888_v46, %v2987_v57  ;;  %v3015_v46 = vld [vmem:[%s2820_s9 + $0x80] sm:$0xff] }
 0x206   : > { %v1230_v44 = vmul.f32 %v1023_v3, %v2938_v32 }
 0x207   : > { %v1025_v5 = vpop.f32.mrf.mxu0 }
 0x208   : > { %v2995_v5 = vld [vmem:[%s2820_s9 + $0x98] sm:$0xff] }
 0x209   : > { %v1028_v6 = vpop.f32.mrf.mxu0  ;;  %v1221_v50 = vmul.f32 %v2874_v42, %v2995_v5 }
 0x20a   : > { %v1231_v38 = vmul.f32 %v1028_v6, %v2934_v23 }
 0x20b   : > { %v1030_v7 = vpop.f32.mrf.mxu0 }
 0x20c   : > { %v3001_v7 = vld [vmem:[%s2820_s9 + $0x90] sm:$0xff] }
 0x20d   : > { %v1033_v11 = vpop.f32.mrf.mxu0 }
 0x20e   : > { %v1232_v30 = vmul.f32 %v1033_v11, %v2930_v16 }
 0x20f   : > { %v1035_v12 = vpop.f32.mrf.mxu0 }
 0x210   : > { %v3009_v12 = vld [vmem:[%s2820_s9 + $0x88] sm:$0xff] }
 0x211   : > { %v1038_v20 = vpop.f32.mrf.mxu0  ;;  %v1219_v42 = vmul.f32 %v2848_v26, %v3009_v12 }
 0x212   : > { %v1233_v22 = vmul.f32 %v1038_v20, %v2927_v15 }
 0x213   : > { %v1040_v27 = vpop.f32.mrf.mxu0 }
 0x214   : > { %1429 = vmatpush2.msra.mxu1 %v1233_v22  ;;  %v1220_v22 = vmul.f32 %v2860_v34, %v3001_v7  ;;  %v1218_v34 = vmul.f32 %v2836_v18, %v3015_v46 }
 0x215   : > { %v2940_v35 = vpop.f32.mrf.mxu0  ;;  %1430 = vmatprep.subr.mxu1 %v2445_v0 }
 0x216   : > { %1431 = vmatpush2.msra.mxu1 %v1232_v30  ;;  %v563_v30 = vld [vmem:[#allocation7 + $0x10] sm:$0xff] }
 0x217   : > { %v1045_v41 = vpop.f32.mrf.mxu0  ;;  %1432 = vmatprep.subr.mxu1 %v2445_v0  ;;  %v629_v26 = vunpack.c.l.bf16 %v563_v30 }
 0x218   : > { %1433 = vmatpush2.msra.mxu1 %v1231_v38  ;;  %v625_v41 = vunpack.c.l.bf16 %v2810_v29  ;;  %v567_v29 = vld [vmem:[#allocation7 + $0x30] sm:$0xff] }
 0x219   : > { %v2952_v31 = vpop.f32.mrf.mxu0  ;;  %1434 = vmatprep.subr.mxu1 %v2445_v0 }
 0x21a   : > { %1435 = vmatpush2.msra.mxu1 %v1230_v44  ;;  %v630_v44 = vunpack.c.h.bf16 %v563_v30 }
 0x21b   : > { %v1050_v19 = vpop.f32.mrf.mxu0  ;;  %1436 = vmatprep.subr.mxu1 %v2445_v0 }
 0x21c   : > { %1437 = vmatpush2.msra.mxu1 %v1229_v48  ;;  %v565_v19 = vld [vmem:[#allocation7 + $0x20] sm:$0xff] }
 0x21d   : > { %v2964_v55 = vpop.f32.mrf.mxu0  ;;  %1438 = vmatprep.subr.mxu1 %v2445_v0  ;;  %v633_v18 = vunpack.c.l.bf16 %v565_v19 }
 0x21e   : > { %1439 = vmatpush2.msra.mxu1 %v1228_v52 }
 0x21f   : > { %v1055_v4 = vpop.f32.mrf.mxu0  ;;  %1440 = vmatprep.subr.mxu1 %v2445_v0 }
 0x220   : > { %1441 = vmatpush2.msra.mxu1 %v1227_v9  ;;  %v634_v9 = vunpack.c.h.bf16 %v565_v19 }
 0x221   : > { %v2976_v63 = vpop.f32.mrf.mxu0  ;;  %1442 = vmatprep.subr.mxu1 %v2445_v0 }
 0x222   : > { %1443 = vmatpush2.msra.mxu1 %v1226_v60 }
 0x223   : > { %v1060_v2 = vpop.f32.mrf.mxu0  ;;  %1444 = vmatprep.subr.mxu1 %v2445_v0 }
 0x224   : > { %1445 = vmatpush2.msra.mxu1 %v1225_v1  ;;  %v638_v1 = vunpack.c.h.bf16 %v567_v29 }
 0x225   : > { %v2989_v3 = vpop.f32.mrf.mxu0  ;;  %1446 = vmatprep.subr.mxu1 %v2445_v0 }
 0x226   : > { %1447 = vmatpush2.msra.mxu1 %v1224_v59  ;;  %v569_v59 = vld [vmem:[#allocation7 + $0x40] sm:$0xff] }
 0x227   : > { %v1065_v6 = vpop.f32.mrf.mxu0  ;;  %1448 = vmatprep.subr.mxu1 %v2445_v0  ;;  %v641_v30 = vunpack.c.l.bf16 %v569_v59 }
 0x228   : > { %1449 = vmatpush2.msra.mxu1 %v1223_v58  ;;  %v637_v6 = vunpack.c.l.bf16 %v567_v29 }
 0x229   : > { %v3003_v11 = vpop.f32.mrf.mxu0  ;;  %1450 = vmatprep.subr.mxu1 %v2445_v0 }
 0x22a   : > { %1451 = vmatpush2.msra.mxu1 %v1222_v54  ;;  %v642_v54 = vunpack.c.h.bf16 %v569_v59 }
 0x22b   : > { %v1070_v20 = vpop.f32.mrf.mxu0  ;;  %1452 = vmatprep.subr.mxu1 %v2445_v0 }
 0x22c   : > { %1453 = vmatpush2.msra.mxu1 %v1221_v50  ;;  %v571_v20 = vld [vmem:[#allocation7 + $0x50] sm:$0xff] }
 0x22d   : > { %v3017_v27 = vpop.f32.mrf.mxu0  ;;  %1454 = vmatprep.subr.mxu1 %v2445_v0 }
 0x22e   : > { %1455 = vmatpush2.msra.mxu1 %v1220_v22 }
 0x22f   : > { %v1075_v38 = vpop.f32.mrf.mxu0  ;;  %1456 = vmatprep.subr.mxu1 %v2445_v0 }
 0x230   : > { %1457 = vmatpush2.msra.mxu1 %v1219_v42  ;;  %v646_v42 = vunpack.c.h.bf16 %v571_v20 }
 0x231   : > { %v3026_v48 = vpop.f32.mrf.mxu0  ;;  %1458 = vmatprep.subr.mxu1 %v2445_v0 }
 0x232   : > { %1459 = vmatpush2.msra.mxu1 %v1218_v34 }
 0x233   : > { %v1080_v52 = vpop.f32.mrf.mxu0  ;;  %1461 = vmatmul.mubr.f32.vlgmr.msra.gmra.mxu1 %v625_v41  ;;  %1621 = vmatprep.subr.mxu1 %v2445_v0  ;;  %v573_v41 = vld [vmem:[#allocation7 + $0x60] sm:$0xff] }
 0x234   : > { %1465 = vmatprep.mubr.f32.mxu1 %v630_v44  ;;  %v645_v44 = vunpack.c.l.bf16 %v571_v20  ;;  %v650_v19 = vunpack.c.h.bf16 %v573_v41  ;;  %v649_v29 = vunpack.c.l.bf16 %v573_v41 }
 0x235   : > { %v3030_v4 = vpop.f32.mrf.mxu0 }
 0x237   : > { %v1085_v60 = vpop.f32.mrf.mxu0  ;;  %1466 = vmatmul.mubr.f32.gmra.mxu1 %v629_v26  ;;  %v575_v26 = vld [vmem:[#allocation7 + $0x70] sm:$0xff] }
 0x238   : > { %1470 = vmatprep.mubr.f32.mxu1 %v634_v9  ;;  %v654_v60 = vunpack.c.h.bf16 %v575_v26  ;;  %v653_v59 = vunpack.c.l.bf16 %v575_v26 }
 0x239   : > { %v3032_v2 = vpop.f32.mrf.mxu0 }
 0x23b   : > { %v1090_v58 = vpop.f32.mrf.mxu0  ;;  %1471 = vmatmul.mubr.f32.gmra.mxu1 %v633_v18 }
 0x23c   : > { %1475 = vmatprep.mubr.f32.mxu1 %v638_v1  ;;  %v577_v1 = vld [vmem:[#allocation7 + $0x80] sm:$0xff] }
 0x23d   : > { %v3034_v50 = vpop.f32.mrf.mxu0  ;;  %v657_v20 = vunpack.c.l.bf16 %v577_v1 }
 0x23f   : > { %v1095_v22 = vpop.f32.mrf.mxu0  ;;  %1476 = vmatmul.mubr.f32.gmra.mxu1 %v637_v6  ;;  %v658_v6 = vunpack.c.h.bf16 %v577_v1 }
 0x240   : > { %1480 = vmatprep.mubr.f32.mxu1 %v642_v54  ;;  %v579_v22 = vld [vmem:[#allocation7 + $0x90] sm:$0xff] }
 0x241   : > { %v1098_v38 = vpop.f32.mrf.mxu0 }
 0x243   : > { %v1100_v34 = vpop.f32.mrf.mxu0  ;;  %1481 = vmatmul.mubr.f32.gmra.mxu1 %v641_v30 }
 0x244   : > { %1485 = vmatprep.mubr.f32.mxu1 %v646_v42  ;;  %v662_v42 = vunpack.c.h.bf16 %v579_v22 }
 0x245   : > { %v1103_v52 = vpop.f32.mrf.mxu0 }
 0x247   : > { %v1105_v9 = vpop.f32.mrf.mxu0  ;;  %1486 = vmatmul.mubr.f32.gmra.mxu1 %v645_v44 }
 0x248   : > { %1490 = vmatprep.mubr.f32.mxu1 %v650_v19  ;;  %v581_v9 = vld [vmem:[#allocation7 + $0xa0] sm:$0xff]  ;;  %v661_v19 = vunpack.c.l.bf16 %v579_v22 }
 0x249   : > { %v1108_v18 = vpop.f32.mrf.mxu0  ;;  %v666_v26 = vunpack.c.h.bf16 %v581_v9  ;;  %v585_v22 = vld [vmem:[#allocation7 + $0xc0] sm:$0xff] }
 0x24a   : > { %v1279_v1 = vmul.f32 %v1108_v18, %v2830_v13 }
 0x24b   : > { %v1110_v58 = vpop.f32.mrf.mxu0  ;;  %1491 = vmatmul.mubr.f32.gmra.mxu1 %v649_v29 }
 0x24c   : > { %1495 = vmatprep.mubr.f32.mxu1 %v654_v60  ;;  %v583_v60 = vld [vmem:[#allocation7 + $0xb0] sm:$0xff] }
 0x24d   : > { %v1113_v54 = vpop.f32.mrf.mxu0  ;;  %v669_v18 = vunpack.c.l.bf16 %v583_v60 }
 0x24e   : > { %v1280_v58 = vmul.f32 %v1113_v54, %v2826_v10  ;;  %v670_v10 = vunpack.c.h.bf16 %v583_v60 }
 0x24f   : > { %v1115_v30 = vpop.f32.mrf.mxu0  ;;  %1496 = vmatmul.mubr.f32.gmra.mxu1 %v653_v59 }
 0x250   : > { %1500 = vmatprep.mubr.f32.mxu1 %v658_v6  ;;  %v1278_v6 = vmul.f32 %v1103_v52, %v2834_v17  ;;  %v1277_v30 = vmul.f32 %v1098_v38, %v2841_v21  ;;  %v674_v17 = vunpack.c.h.bf16 %v585_v22  ;;  %v1275_v21 = vmul.f32 %v3032_v2, %v2853_v28 }
 0x251   : > { %v1118_v34 = vpop.f32.mrf.mxu0  ;;  %v1273_v28 = vmul.f32 %v3026_v48, %v2866_v37  ;;  %v1271_v37 = vmul.f32 %v3003_v11, %v2880_v43  ;;  %v1269_v43 = vmul.f32 %v2976_v63, %v2894_v47  ;;  %v1267_v47 = vmul.f32 %v2952_v31, %v2908_v51 }
 0x252   : > { %v1281_v41 = vmul.f32 %v1118_v34, %v2823_v8  ;;  %v665_v8 = vunpack.c.l.bf16 %v581_v9  ;;  %v673_v34 = vunpack.c.l.bf16 %v585_v22 }
 0x253   : > { %v1120_v44 = vpop.f32.mrf.mxu0  ;;  %1501 = vmatmul.mubr.f32.gmra.mxu1 %v657_v20  ;;  %v1276_v20 = vmul.f32 %v3034_v50, %v2846_v25  ;;  %v1274_v25 = vmul.f32 %v3030_v4, %v2858_v33  ;;  %v1272_v33 = vmul.f32 %v3017_v27, %v2872_v40  ;;  %v1270_v40 = vmul.f32 %v2989_v3, %v2886_v45 }
 0x254   : > { %1622 = vmatpush1.msra.mxu1 %v1281_v41  ;;  %1505 = vmatprep.mubr.f32.mxu1 %v662_v42  ;;  %v587_v42 = vld [vmem:[#allocation7 + $0xd0] sm:$0xff]  ;;  %v589_v41 = vld [vmem:[#allocation7 + $0xe0] sm:$0xff]  ;;  %v1268_v45 = vmul.f32 %v2964_v55, %v2900_v49  ;;  %v1266_v49 = vmul.f32 %v2940_v35, %v2914_v14 }
 0x255   : > { %v3038_v29 = vpop.f32.mrf.mxu0  ;;  %1623 = vmatprep.subr.mxu1 %v2445_v0  ;;  %v678_v50 = vunpack.c.h.bf16 %v587_v42  ;;  %v677_v44 = vunpack.c.l.bf16 %v587_v42  ;;  %v682_v4 = vunpack.c.h.bf16 %v589_v41 }
 0x256   : > { %1624 = vmatpush1.msra.mxu1 %v1280_v58  ;;  %v591_v58 = vld [vmem:[#allocation7 + $0xf0] sm:$0xff] }
 0x257   : > { %v1125_v59 = vpop.f32.mrf.mxu0  ;;  %1506 = vmatmul.mubr.f32.gmra.mxu1 %v661_v19  ;;  %1625 = vmatprep.subr.mxu1 %v2445_v0  ;;  %v686_v27 = vunpack.c.h.bf16 %v591_v58 }
 0x258   : > { %1626 = vmatpush1.msra.mxu1 %v1279_v1  ;;  %1510 = vmatprep.mubr.f32.mxu1 %v666_v26  ;;  %v681_v26 = vunpack.c.l.bf16 %v589_v41  ;;  %v593_v1 = vld [vmem:[#allocation7 + $0x100] sm:$0xff]  ;;  %v685_v59 = vunpack.c.l.bf16 %v591_v58  ;;  %v603_v41 = vld [vmem:[#allocation7 + $0x150] sm:$0xff] }
 0x259   : > { %v3044_v54 = vpop.f32.mrf.mxu0  ;;  %1627 = vmatprep.subr.mxu1 %v2445_v0  ;;  %v690_v3 = vunpack.c.h.bf16 %v593_v1 }
 0x25a   : > { %1628 = vmatpush1.msra.mxu1 %v1278_v6  ;;  %v595_v6 = vld [vmem:[#allocation7 + $0x110] sm:$0xff] }
 0x25b   : > { %v1130_v13 = vpop.f32.mrf.mxu0  ;;  %1511 = vmatmul.mubr.f32.gmra.mxu1 %v665_v8  ;;  %1629 = vmatprep.subr.mxu1 %v2445_v0  ;;  %v694_v55 = vunpack.c.h.bf16 %v595_v6  ;;  %v693_v51 = vunpack.c.l.bf16 %v595_v6 }
 0x25c   : > { %1630 = vmatpush1.msra.mxu1 %v1277_v30  ;;  %1515 = vmatprep.mubr.f32.mxu1 %v670_v10  ;;  %v689_v10 = vunpack.c.l.bf16 %v593_v1  ;;  %v597_v30 = vld [vmem:[#allocation7 + $0x120] sm:$0xff] }
 0x25d   : > { %v3051_v52 = vpop.f32.mrf.mxu0  ;;  %1631 = vmatprep.subr.mxu1 %v2445_v0  ;;  %v698_v31 = vunpack.c.h.bf16 %v597_v30  ;;  %v697_v35 = vunpack.c.l.bf16 %v597_v30 }
 0x25e   : > { %1632 = vmatpush1.msra.mxu1 %v1276_v20  ;;  %v599_v20 = vld [vmem:[#allocation7 + $0x130] sm:$0xff] }
 0x25f   : > { %v1135_v38 = vpop.f32.mrf.mxu0  ;;  %1516 = vmatmul.mubr.f32.gmra.mxu1 %v669_v18  ;;  %1633 = vmatprep.subr.mxu1 %v2445_v0 }
 0x260   : > { %1634 = vmatpush1.msra.mxu1 %v1275_v21  ;;  %1520 = vmatprep.mubr.f32.mxu1 %v674_v17  ;;  %v702_v17 = vunpack.c.h.bf16 %v599_v20  ;;  %v601_v21 = vld [vmem:[#allocation7 + $0x140] sm:$0xff] }
 0x261   : > { %v3059_v9 = vpop.f32.mrf.mxu0  ;;  %1635 = vmatprep.subr.mxu1 %v2445_v0 }
 0x262   : > { %1636 = vmatpush1.msra.mxu1 %v1274_v25  ;;  %v706_v25 = vunpack.c.h.bf16 %v601_v21 }
 0x263   : > { %v1140_v2 = vpop.f32.mrf.mxu0  ;;  %1521 = vmatmul.mubr.f32.gmra.mxu1 %v673_v34  ;;  %1637 = vmatprep.subr.mxu1 %v2445_v0  ;;  %v701_v34 = vunpack.c.l.bf16 %v599_v20 }
 0x264   : > { %1638 = vmatpush1.msra.mxu1 %v1273_v28  ;;  %1525 = vmatprep.mubr.f32.mxu1 %v678_v50  ;;  %v705_v2 = vunpack.c.l.bf16 %v601_v21 }
 0x265   : > { %v3067_v19 = vpop.f32.mrf.mxu0  ;;  %1639 = vmatprep.subr.mxu1 %v2445_v0 }
 0x266   : > { %1640 = vmatpush1.msra.mxu1 %v1272_v33 }
 0x267   : > { %v1145_v48 = vpop.f32.mrf.mxu0  ;;  %1526 = vmatmul.mubr.f32.gmra.mxu1 %v677_v44  ;;  %1641 = vmatprep.subr.mxu1 %v2445_v0  ;;  %v710_v44 = vunpack.c.h.bf16 %v603_v41 }
 0x268   : > { %1642 = vmatpush1.msra.mxu1 %v1271_v37  ;;  %1530 = vmatprep.mubr.f32.mxu1 %v682_v4  ;;  %v605_v4 = vld [vmem:[#allocation7 + $0x160] sm:$0xff]  ;;  %v709_v37 = vunpack.c.l.bf16 %v603_v41 }
 0x269   : > { %v3075_v60 = vpop.f32.mrf.mxu0  ;;  %1643 = vmatprep.subr.mxu1 %v2445_v0  ;;  %v714_v48 = vunpack.c.h.bf16 %v605_v4  ;;  %v713_v1 = vunpack.c.l.bf16 %v605_v4 }
 0x26a   : > { %1644 = vmatpush1.msra.mxu1 %v1270_v40  ;;  %v607_v40 = vld [vmem:[#allocation7 + $0x170] sm:$0xff]  ;;  %v1287_v4 = vmul.f32 %v3075_v60, %v2981_v62  ;;  %v1284_v60 = vmul.f32 %v3051_v52, %v3001_v7  ;;  %v566_v52 = vld [vmem:[#allocation7 + $0x28] sm:$0xff] }
 0x26b   : > { %v1150_v11 = vpop.f32.mrf.mxu0  ;;  %1531 = vmatmul.mubr.f32.gmra.mxu1 %v681_v26  ;;  %1645 = vmatprep.subr.mxu1 %v2445_v0 }
 0x26c   : > { %1646 = vmatpush1.msra.mxu1 %v1269_v43  ;;  %1535 = vmatprep.mubr.f32.mxu1 %v686_v27  ;;  %v718_v43 = vunpack.c.h.bf16 %v607_v40 }
 0x26d   : > { %v3083_v8 = vpop.f32.mrf.mxu0  ;;  %1647 = vmatprep.subr.mxu1 %v2445_v0 }
 0x26e   : > { %1648 = vmatpush1.msra.mxu1 %v1268_v45 }
 0x26f   : > { %v1155_v63 = vpop.f32.mrf.mxu0  ;;  %1536 = vmatmul.mubr.f32.gmra.mxu1 %v685_v59  ;;  %1649 = vmatprep.subr.mxu1 %v2445_v0  ;;  %v609_v59 = vld [vmem:[#allocation7 + $0x180] sm:$0xff] }
 0x270   : > { %1650 = vmatpush1.msra.mxu1 %v1267_v47  ;;  %1540 = vmatprep.mubr.f32.mxu1 %v690_v3  ;;  %v717_v3 = vunpack.c.l.bf16 %v607_v40  ;;  %v722_v6 = vunpack.c.h.bf16 %v609_v59  ;;  %v611_v63 = vld [vmem:[#allocation7 + $0x190] sm:$0xff] }
 0x271   : > { %v3091_v22 = vpop.f32.mrf.mxu0  ;;  %1651 = vmatprep.subr.mxu1 %v2445_v0  ;;  %v725_v20 = vunpack.c.l.bf16 %v611_v63 }
 0x272   : > { %1652 = vmatpush1.msra.mxu1 %v1266_v49  ;;  %v721_v49 = vunpack.c.l.bf16 %v609_v59 }
 0x273   : > { %v1160_v13 = vpop.f32.mrf.mxu0  ;;  %1541 = vmatmul.mubr.f32.gmra.mxu1 %v689_v10  ;;  %1653 = vmatprep.subr.mxu1 %v2445_v0 }
 0x274   : > { %1545 = vmatprep.mubr.f32.mxu1 %v694_v55  ;;  %v726_v55 = vunpack.c.h.bf16 %v611_v63  ;;  %v613_v13 = vld [vmem:[#allocation7 + $0x1a0] sm:$0xff]  ;;  %v578_v63 = vld [vmem:[#allocation7 + $0x88] sm:$0xff] }
 0x275   : > { %v3095_v18 = vpop.f32.mrf.mxu0 }
 0x277   : > { %v1165_v14 = vpop.f32.mrf.mxu0  ;;  %1546 = vmatmul.mubr.f32.gmra.mxu1 %v693_v51 }
 0x278   : > { %1550 = vmatprep.mubr.f32.mxu1 %v698_v31 }
 0x279   : > { %v3097_v42 = vpop.f32.mrf.mxu0 }
 0x27b   : > { %v1170_v38 = vpop.f32.mrf.mxu0  ;;  %1551 = vmatmul.mubr.f32.gmra.mxu1 %v697_v35  ;;  %v730_v35 = vunpack.c.h.bf16 %v613_v13 }
 0x27c   : > { %1555 = vmatprep.mubr.f32.mxu1 %v702_v17  ;;  %v615_v17 = vld [vmem:[#allocation7 + $0x1b0] sm:$0xff]  ;;  %v729_v38 = vunpack.c.l.bf16 %v613_v13 }
 0x27d   : > { %v3099_v50 = vpop.f32.mrf.mxu0 }
 0x27e   : > { %v1292_v41 = vmul.f32 %v3099_v50, %v2950_v36  ;;  %v621_v50 = vld [vmem:[#allocation7 + $0x1e0] sm:$0xff] }
 0x27f   : > { %v1175_v28 = vpop.f32.mrf.mxu0  ;;  %1556 = vmatmul.mubr.f32.gmra.mxu1 %v701_v34  ;;  %v734_v34 = vunpack.c.h.bf16 %v615_v17 }
 0x280   : > { %1560 = vmatprep.mubr.f32.mxu1 %v706_v25 }
 0x281   : > { %v1178_v33 = vpop.f32.mrf.mxu0 }
 0x282   : > { %v1293_v25 = vmul.f32 %v1178_v33, %v2945_v39  ;;  %v1289_v33 = vmul.f32 %v3091_v22, %v2969_v56  ;;  %v745_v56 = vunpack.c.l.bf16 %v621_v50  ;;  %v1286_v22 = vmul.f32 %v3067_v19, %v2987_v57  ;;  %v564_v19 = vld [vmem:[#allocation7 + $0x18] sm:$0xff] }
 0x283   : > { %v1180_v58 = vpop.f32.mrf.mxu0  ;;  %1561 = vmatmul.mubr.f32.gmra.mxu1 %v705_v2  ;;  %v1291_v2 = vmul.f32 %v3097_v42, %v2957_v24  ;;  %v1288_v42 = vmul.f32 %v3083_v8, %v2974_v61  ;;  %v562_v8 = vld [vmem:[#allocation7 + $0x8] sm:$0xff]  ;;  %v632_v7 = vunpack.c.h.bf16 %v564_v19 }
 0x284   : > { %1565 = vmatprep.mubr.f32.mxu1 %v710_v44  ;;  %v1290_v44 = vmul.f32 %v3095_v18, %v2962_v53  ;;  %v746_v53 = vunpack.c.h.bf16 %v621_v50  ;;  %v623_v18 = vld [vmem:[#allocation7 + $0x1f0] sm:$0xff]  ;;  %v1285_v58 = vmul.f32 %v3059_v9, %v2995_v5  ;;  %v628_v57 = vunpack.c.h.bf16 %v562_v8 }
 0x285   : > { %v1183_v26 = vpop.f32.mrf.mxu0  ;;  %v750_v61 = vunpack.c.h.bf16 %v623_v18  ;;  %v749_v62 = vunpack.c.l.bf16 %v623_v18  ;;  %v627_v5 = vunpack.c.l.bf16 %v562_v8  ;;  %v1282_v9 = vmul.f32 %v3038_v29, %v3015_v46  ;;  %v572_v29 = vld [vmem:[#allocation7 + $0x58] sm:$0xff] }
 0x286   : > { %v647_v59 = vunpack.c.l.bf16 %v572_v29 }
 0x287   : > { %v1185_v27 = vpop.f32.mrf.mxu0  ;;  %1566 = vmatmul.mubr.f32.gmra.mxu1 %v709_v37  ;;  %v1283_v37 = vmul.f32 %v3044_v54, %v3009_v12  ;;  %v568_v12 = vld [vmem:[#allocation7 + $0x38] sm:$0xff]  ;;  %v635_v54 = vunpack.c.l.bf16 %v566_v52 }
 0x288   : > { %1570 = vmatprep.mubr.f32.mxu1 %v714_v48  ;;  %v631_v48 = vunpack.c.l.bf16 %v564_v19  ;;  %v640_v40 = vunpack.c.h.bf16 %v568_v12  ;;  %v570_v27 = vld [vmem:[#allocation7 + $0x48] sm:$0xff] }
 0x289   : > { %v1188_v11 = vpop.f32.mrf.mxu0  ;;  %v644_v46 = vunpack.c.h.bf16 %v570_v27 }
 0x28a   : > { %v1295_v21 = vmul.f32 %v1188_v11, %v2934_v23  ;;  %v733_v23 = vunpack.c.l.bf16 %v615_v17  ;;  %v574_v11 = vld [vmem:[#allocation7 + $0x68] sm:$0xff] }
 0x28b   : > { %v1190_v45 = vpop.f32.mrf.mxu0  ;;  %1571 = vmatmul.mubr.f32.gmra.mxu1 %v713_v1  ;;  %v639_v1 = vunpack.c.l.bf16 %v568_v12 }
 0x28c   : > { %1575 = vmatprep.mubr.f32.mxu1 %v718_v43  ;;  %v643_v43 = vunpack.c.l.bf16 %v570_v27  ;;  %v652_v45 = vunpack.c.h.bf16 %v574_v11 }
 0x28d   : > { %v1193_v47 = vpop.f32.mrf.mxu0 }
 0x28e   : > { %v1296_v14 = vmul.f32 %v1193_v47, %v2930_v16  ;;  %v617_v16 = vld [vmem:[#allocation7 + $0x1c0] sm:$0xff] }
 0x28f   : > { %v1195_v10 = vpop.f32.mrf.mxu0  ;;  %1576 = vmatmul.mubr.f32.gmra.mxu1 %v717_v3  ;;  %v738_v28 = vunpack.c.h.bf16 %v617_v16  ;;  %v737_v39 = vunpack.c.l.bf16 %v617_v16  ;;  %v576_v3 = vld [vmem:[#allocation7 + $0x78] sm:$0xff] }
 0x290   : > { %1580 = vmatprep.mubr.f32.mxu1 %v722_v6  ;;  %v651_v6 = vunpack.c.l.bf16 %v574_v11  ;;  %v656_v47 = vunpack.c.h.bf16 %v576_v3  ;;  %v655_v10 = vunpack.c.l.bf16 %v576_v3 }
 0x291   : > { %v1198_v30 = vpop.f32.mrf.mxu0 }
 0x292   : > { %v1297_v51 = vmul.f32 %v1198_v30, %v2927_v15  ;;  %v1294_v15 = vmul.f32 %v1183_v26, %v2938_v32  ;;  %v619_v32 = vld [vmem:[#allocation7 + $0x1d0] sm:$0xff]  ;;  %v636_v26 = vunpack.c.h.bf16 %v566_v52  ;;  %v659_v30 = vunpack.c.l.bf16 %v578_v63 }
 0x293   : > { %v1200_v31 = vpop.f32.mrf.mxu0  ;;  %1581 = vmatmul.mubr.f32.gmra.mxu1 %v721_v49  ;;  %v742_v36 = vunpack.c.h.bf16 %v619_v32  ;;  %v741_v24 = vunpack.c.l.bf16 %v619_v32  ;;  %v660_v49 = vunpack.c.h.bf16 %v578_v63  ;;  %v592_v32 = vld [vmem:[#allocation7 + $0xf8] sm:$0xff] }
 0x294   : > { %1654 = vmatpush2.msra.mxu1 %v1297_v51  ;;  %1585 = vmatprep.mubr.f32.mxu1 %v726_v55  ;;  %v580_v55 = vld [vmem:[#allocation7 + $0x98] sm:$0xff]  ;;  %v582_v51 = vld [vmem:[#allocation7 + $0xa8] sm:$0xff] }
 0x295   : > { %1655 = vmatprep.subr.mxu1 %v2445_v0  ;;  %v664_v13 = vunpack.c.h.bf16 %v580_v55  ;;  %v663_v31 = vunpack.c.l.bf16 %v580_v55 }
 0x296   : > { %1656 = vmatpush2.msra.mxu1 %v1296_v14  ;;  %v584_v14 = vld [vmem:[#allocation7 + $0xb8] sm:$0xff] }
 0x297   : > { %1586 = vmatmul.mubr.f32.gmra.mxu1 %v725_v20  ;;  %1657 = vmatprep.subr.mxu1 %v2445_v0  ;;  %v668_v20 = vunpack.c.h.bf16 %v582_v51  ;;  %v672_v17 = vunpack.c.h.bf16 %v584_v14 }
 0x298   : > { %1658 = vmatpush2.msra.mxu1 %v1295_v21  ;;  %1590 = vmatprep.mubr.f32.mxu1 %v730_v35  ;;  %v667_v35 = vunpack.c.l.bf16 %v582_v51  ;;  %v586_v21 = vld [vmem:[#allocation7 + $0xc8] sm:$0xff] }
 0x299   : > { %1659 = vmatprep.subr.mxu1 %v2445_v0  ;;  %v675_v16 = vunpack.c.l.bf16 %v586_v21  ;;  %v614_v51 = vld [vmem:[#allocation7 + $0x1a8] sm:$0xff] }
 0x29a   : > { %1660 = vmatpush2.msra.mxu1 %v1294_v15  ;;  %v676_v15 = vunpack.c.h.bf16 %v586_v21 }
 0x29b   : > { %1591 = vmatmul.mubr.f32.gmra.mxu1 %v729_v38  ;;  %1661 = vmatprep.subr.mxu1 %v2445_v0  ;;  %v671_v38 = vunpack.c.l.bf16 %v584_v14  ;;  %v732_v14 = vunpack.c.h.bf16 %v614_v51 }
 0x29c   : > { %1662 = vmatpush2.msra.mxu1 %v1293_v25  ;;  %1595 = vmatprep.mubr.f32.mxu1 %v734_v34  ;;  %v588_v34 = vld [vmem:[#allocation7 + $0xd8] sm:$0xff] }
 0x29d   : > { %1663 = vmatprep.subr.mxu1 %v2445_v0  ;;  %v680_v25 = vunpack.c.h.bf16 %v588_v34 }
 0x29e   : > { %1664 = vmatpush2.msra.mxu1 %v1292_v41  ;;  %v679_v41 = vunpack.c.l.bf16 %v588_v34 }
 0x29f   : > { %1596 = vmatmul.mubr.f32.gmra.mxu1 %v733_v23  ;;  %1665 = vmatprep.subr.mxu1 %v2445_v0  ;;  %v590_v23 = vld [vmem:[#allocation7 + $0xe8] sm:$0xff] }
 0x2a0   : > { %1666 = vmatpush2.msra.mxu1 %v1291_v2  ;;  %1600 = vmatprep.mubr.f32.mxu1 %v738_v28  ;;  %v684_v28 = vunpack.c.h.bf16 %v590_v23  ;;  %v683_v2 = vunpack.c.l.bf16 %v590_v23 }
 0x2a1   : > { %1667 = vmatprep.subr.mxu1 %v2445_v0 }
 0x2a2   : > { %1668 = vmatpush2.msra.mxu1 %v1290_v44  ;;  %v594_v44 = vld [vmem:[#allocation7 + $0x108] sm:$0xff] }
 0x2a3   : > { %1601 = vmatmul.mubr.f32.gmra.mxu1 %v737_v39  ;;  %1669 = vmatprep.subr.mxu1 %v2445_v0  ;;  %v688_v39 = vunpack.c.h.bf16 %v592_v32  ;;  %v692_v50 = vunpack.c.h.bf16 %v594_v44 }
 0x2a4   : > { %1670 = vmatpush2.msra.mxu1 %v1289_v33  ;;  %1605 = vmatprep.mubr.f32.mxu1 %v742_v36  ;;  %v687_v36 = vunpack.c.l.bf16 %v592_v32  ;;  %v596_v33 = vld [vmem:[#allocation7 + $0x118] sm:$0xff] }
 0x2a5   : > { %1671 = vmatprep.subr.mxu1 %v2445_v0  ;;  %v620_v32 = vld [vmem:[#allocation7 + $0x1d8] sm:$0xff] }
 0x2a6   : > { %1672 = vmatpush2.msra.mxu1 %v1288_v42  ;;  %v696_v42 = vunpack.c.h.bf16 %v596_v33 }
 0x2a7   : > { %1606 = vmatmul.mubr.f32.gmra.mxu1 %v741_v24  ;;  %1673 = vmatprep.subr.mxu1 %v2445_v0  ;;  %v691_v24 = vunpack.c.l.bf16 %v594_v44  ;;  %v744_v44 = vunpack.c.h.bf16 %v620_v32 }
 0x2a8   : > { %1674 = vmatpush2.msra.mxu1 %v1287_v4  ;;  %1610 = vmatprep.mubr.f32.mxu1 %v746_v53  ;;  %v598_v53 = vld [vmem:[#allocation7 + $0x128] sm:$0xff]  ;;  %v695_v4 = vunpack.c.l.bf16 %v596_v33 }
 0x2a9   : > { %1675 = vmatprep.subr.mxu1 %v2445_v0 }
 0x2aa   : > { %1676 = vmatpush2.msra.mxu1 %v1286_v22 }
 0x2ab   : > { %1611 = vmatmul.mubr.f32.gmra.mxu1 %v745_v56  ;;  %1677 = vmatprep.subr.mxu1 %v2445_v0  ;;  %v700_v56 = vunpack.c.h.bf16 %v598_v53 }
 0x2ac   : > { %1678 = vmatpush2.msra.mxu1 %v1285_v58  ;;  %1615 = vmatprep.mubr.f32.mxu1 %v750_v61  ;;  %v600_v61 = vld [vmem:[#allocation7 + $0x138] sm:$0xff]  ;;  %v699_v58 = vunpack.c.l.bf16 %v598_v53 }
 0x2ad   : > { %1679 = vmatprep.subr.mxu1 %v2445_v0 }
 0x2ae   : > { %1680 = vmatpush2.msra.mxu1 %v1284_v60 }
 0x2af   : > { %1616 = vmatmul.mubr.f32.gmra.mxu1 %v749_v62  ;;  %1681 = vmatprep.subr.mxu1 %v2445_v0  ;;  %v704_v62 = vunpack.c.h.bf16 %v600_v61 }
 0x2b0   : > { %1682 = vmatpush2.msra.mxu1 %v1283_v37  ;;  %1685 = vmatprep.mubr.f32.mxu1 %v628_v57  ;;  %v602_v57 = vld [vmem:[#allocation7 + $0x148] sm:$0xff]  ;;  %v703_v37 = vunpack.c.l.bf16 %v600_v61 }
 0x2b1   : > { %1683 = vmatprep.subr.mxu1 %v2445_v0  ;;  %v648_v0 = vunpack.c.h.bf16 %v572_v29  ;;  %v608_v29 = vld [vmem:[#allocation7 + $0x178] sm:$0xff] }
 0x2b2   : > { %1684 = vmatpush2.msra.mxu1 %v1282_v9  ;;  %v720_v11 = vunpack.c.h.bf16 %v608_v29 }
 0x2b3   : > { %1686 = vmatmul.mubr.f32.vlgmr.msra.gmra.mxu1 %v627_v5  ;;  %v708_v5 = vunpack.c.h.bf16 %v602_v57 }
 0x2b4   : > { %1690 = vmatprep.mubr.f32.mxu1 %v632_v7  ;;  %v604_v7 = vld [vmem:[#allocation7 + $0x158] sm:$0xff] }
 0x2b5   : > { %v711_v27 = vunpack.c.l.bf16 %v604_v7 }
 0x2b7   : > { %1691 = vmatmul.mubr.f32.gmra.mxu1 %v631_v48  ;;  %v707_v48 = vunpack.c.l.bf16 %v602_v57 }
 0x2b8   : > { %1695 = vmatprep.mubr.f32.mxu1 %v636_v26  ;;  %v712_v26 = vunpack.c.h.bf16 %v604_v7 }
 0x2bb   : > { %1696 = vmatmul.mubr.f32.gmra.mxu1 %v635_v54  ;;  %v606_v54 = vld [vmem:[#allocation7 + $0x168] sm:$0xff] }
 0x2bc   : > { %1700 = vmatprep.mubr.f32.mxu1 %v640_v40 }
 0x2bf   : > { %1701 = vmatmul.mubr.f32.gmra.mxu1 %v639_v1  ;;  %v716_v1 = vunpack.c.h.bf16 %v606_v54 }
 0x2c0   : > { %1705 = vmatprep.mubr.f32.mxu1 %v644_v46 }
 0x2c3   : > { %1706 = vmatmul.mubr.f32.gmra.mxu1 %v643_v43 }
 0x2c4   : > { %1710 = vmatprep.mubr.f32.mxu1 %v648_v0  ;;  %v715_v0 = vunpack.c.l.bf16 %v606_v54 }
 0x2c7   : > { %1711 = vmatmul.mubr.f32.gmra.mxu1 %v647_v59 }
 0x2c8   : > { %1715 = vmatprep.mubr.f32.mxu1 %v652_v45  ;;  %v610_v45 = vld [vmem:[#allocation7 + $0x188] sm:$0xff] }
 0x2c9   : > { %v723_v55 = vunpack.c.l.bf16 %v610_v45 }
 0x2cb   : > { %1716 = vmatmul.mubr.f32.gmra.mxu1 %v651_v6  ;;  %v719_v6 = vunpack.c.l.bf16 %v608_v29 }
 0x2cc   : > { %1720 = vmatprep.mubr.f32.mxu1 %v656_v47  ;;  %v724_v47 = vunpack.c.h.bf16 %v610_v45 }
 0x2cf   : > { %1721 = vmatmul.mubr.f32.gmra.mxu1 %v655_v10  ;;  %v612_v10 = vld [vmem:[#allocation7 + $0x198] sm:$0xff] }
 0x2d0   : > { %1725 = vmatprep.mubr.f32.mxu1 %v660_v49 }
 0x2d3   : > { %1726 = vmatmul.mubr.f32.gmra.mxu1 %v659_v30  ;;  %v728_v30 = vunpack.c.h.bf16 %v612_v10 }
 0x2d4   : > { %1730 = vmatprep.mubr.f32.mxu1 %v664_v13 }
 0x2d7   : > { %1731 = vmatmul.mubr.f32.gmra.mxu1 %v663_v31 }
 0x2d8   : > { %1735 = vmatprep.mubr.f32.mxu1 %v668_v20  ;;  %v727_v20 = vunpack.c.l.bf16 %v612_v10 }
 0x2db   : > { %1736 = vmatmul.mubr.f32.gmra.mxu1 %v667_v35 }
 0x2dc   : > { %1740 = vmatprep.mubr.f32.mxu1 %v672_v17  ;;  %v616_v17 = vld [vmem:[#allocation7 + $0x1b8] sm:$0xff] }
 0x2dd   : > { %v735_v23 = vunpack.c.l.bf16 %v616_v17 }
 0x2df   : > { %1741 = vmatmul.mubr.f32.gmra.mxu1 %v671_v38  ;;  %v731_v38 = vunpack.c.l.bf16 %v614_v51 }
 0x2e0   : > { %1745 = vmatprep.mubr.f32.mxu1 %v676_v15  ;;  %v736_v15 = vunpack.c.h.bf16 %v616_v17 }
 0x2e3   : > { %1746 = vmatmul.mubr.f32.gmra.mxu1 %v675_v16  ;;  %v618_v16 = vld [vmem:[#allocation7 + $0x1c8] sm:$0xff] }
 0x2e4   : > { %1750 = vmatprep.mubr.f32.mxu1 %v680_v25 }
 0x2e7   : > { %1751 = vmatmul.mubr.f32.gmra.mxu1 %v679_v41  ;;  %v740_v41 = vunpack.c.h.bf16 %v618_v16 }
 0x2e8   : > { %1755 = vmatprep.mubr.f32.mxu1 %v684_v28 }
 0x2eb   : > { %1756 = vmatmul.mubr.f32.gmra.mxu1 %v683_v2 }
 0x2ec   : > { %1760 = vmatprep.mubr.f32.mxu1 %v688_v39  ;;  %v739_v39 = vunpack.c.l.bf16 %v618_v16 }
 0x2ef   : > { %1761 = vmatmul.mubr.f32.gmra.mxu1 %v687_v36 }
 0x2f0   : > { %1765 = vmatprep.mubr.f32.mxu1 %v692_v50  ;;  %v622_v50 = vld [vmem:[#allocation7 + $0x1e8] sm:$0xff] }
 0x2f3   : > { %v3143_v18 = vpop.f32.mrf.mxu1  ;;  %1766 = vmatmul.mubr.f32.gmra.mxu1 %v691_v24  ;;  %v743_v24 = vunpack.c.l.bf16 %v620_v32 }
 0x2f4   : > { %1770 = vmatprep.mubr.f32.mxu1 %v696_v42  ;;  %v748_v42 = vunpack.c.h.bf16 %v622_v50 }
 0x2f5   : > { %v1464_v22 = vpop.f32.mrf.mxu1 }
 0x2f6   : > { %v747_v22 = vunpack.c.l.bf16 %v622_v50  ;;  %v1847_v50 = vld [vmem:[%s3210_s18 + $0x8] sm:$0xff] }
 0x2f7   : > { %v3145_v8 = vpop.f32.mrf.mxu1  ;;  %1771 = vmatmul.mubr.f32.gmra.mxu1 %v695_v4  ;;  %v624_v4 = vld [vmem:[#allocation7 + $0x1f8] sm:$0xff] }
 0x2f8   : > { %1775 = vmatprep.mubr.f32.mxu1 %v700_v56  ;;  %v752_v61 = vunpack.c.h.bf16 %v624_v4 }
 0x2f9   : > { %v1469_v60 = vpop.f32.mrf.mxu1 }
 0x2fa   : > { %v751_v60 = vunpack.c.l.bf16 %v624_v4 }
 0x2fb   : > { %v3147_v19 = vpop.f32.mrf.mxu1  ;;  %1776 = vmatmul.mubr.f32.gmra.mxu1 %v699_v58 }
 0x2fc   : > { %1780 = vmatprep.mubr.f32.mxu1 %v704_v62 }
 0x2fd   : > { %v1474_v9 = vpop.f32.mrf.mxu1 }
 0x2ff   : > { %v3149_v52 = vpop.f32.mrf.mxu1  ;;  %1781 = vmatmul.mubr.f32.gmra.mxu1 %v703_v37 }
 0x300   : > { %1785 = vmatprep.mubr.f32.mxu1 %v708_v5 }
 0x301   : > { %v1479_v12 = vpop.f32.mrf.mxu1 }
 0x303   : > { %v3151_v40 = vpop.f32.mrf.mxu1  ;;  %1786 = vmatmul.mubr.f32.gmra.mxu1 %v707_v48 }
 0x304   : > { %1790 = vmatprep.mubr.f32.mxu1 %v712_v26 }
 0x305   : > { %v1484_v46 = vpop.f32.mrf.mxu1 }
 0x307   : > { %v3153_v43 = vpop.f32.mrf.mxu1  ;;  %1791 = vmatmul.mubr.f32.gmra.mxu1 %v711_v27 }
 0x308   : > { %1795 = vmatprep.mubr.f32.mxu1 %v716_v1 }
 0x309   : > { %v1489_v59 = vpop.f32.mrf.mxu1 }
 0x30b   : > { %v3155_v3 = vpop.f32.mrf.mxu1  ;;  %1796 = vmatmul.mubr.f32.gmra.mxu1 %v715_v0 }
 0x30c   : > { %1800 = vmatprep.mubr.f32.mxu1 %v720_v11 }
 0x30d   : > { %v1494_v63 = vpop.f32.mrf.mxu1 }
 0x30f   : > { %v3157_v49 = vpop.f32.mrf.mxu1  ;;  %1801 = vmatmul.mubr.f32.gmra.mxu1 %v719_v6 }
 0x310   : > { %1805 = vmatprep.mubr.f32.mxu1 %v724_v47 }
 0x311   : > { %v1499_v13 = vpop.f32.mrf.mxu1 }
 0x313   : > { %v3159_v31 = vpop.f32.mrf.mxu1  ;;  %1806 = vmatmul.mubr.f32.gmra.mxu1 %v723_v55 }
 0x314   : > { %1810 = vmatprep.mubr.f32.mxu1 %v728_v30 }
 0x315   : > { %v1504_v35 = vpop.f32.mrf.mxu1 }
 0x317   : > { %v3161_v21 = vpop.f32.mrf.mxu1  ;;  %1811 = vmatmul.mubr.f32.gmra.mxu1 %v727_v20 }
 0x318   : > { %1815 = vmatprep.mubr.f32.mxu1 %v732_v14 }
 0x319   : > { %v1509_v34 = vpop.f32.mrf.mxu1 }
 0x31b   : > { %v3163_v25 = vpop.f32.mrf.mxu1  ;;  %1816 = vmatmul.mubr.f32.gmra.mxu1 %v731_v38 }
 0x31c   : > { %1820 = vmatprep.mubr.f32.mxu1 %v736_v15 }
 0x31d   : > { %v1514_v28 = vpop.f32.mrf.mxu1 }
 0x31e   : > { %v1846_v28 = vld [vmem:[%s3210_s18] sm:$0xff] }
 0x31f   : > { %v3165_v2 = vpop.f32.mrf.mxu1  ;;  %1821 = vmatmul.mubr.f32.gmra.mxu1 %v735_v23  ;;  %v3205_v23 = vstv %s1394_s7 }
 0x320   : > { %1825 = vmatprep.mubr.f32.mxu1 %v740_v41 }
 0x321   : > { %v1519_v36 = vpop.f32.mrf.mxu1 }
 0x323   : > { %v3167_v33 = vpop.f32.mrf.mxu1  ;;  %1826 = vmatmul.mubr.f32.gmra.mxu1 %v739_v39  ;;  %v1463_v39 = vadd.f32 %v3143_v18, %v3205_v23 }
 0x324   : > { %1830 = vmatprep.mubr.f32.mxu1 %v744_v44  ;;  %v1878_v44 = vsub.f32 1.0, %v1846_v28 }
 0x325   : > { %v1524_v53 = vpop.f32.mrf.mxu1 }
 0x326   : > { %v1468_v53 = vadd.f32 %v3145_v8, %v3205_v23  ;;  %v1849_v8 = vld [vmem:[%s3210_s18 + $0x18] sm:$0xff] }
 0x327   : > { %v3169_v56 = vpop.f32.mrf.mxu1  ;;  %1831 = vmatmul.mubr.f32.gmra.mxu1 %v743_v24 }
 0x328   : > { %1835 = vmatprep.mubr.f32.mxu1 %v748_v42 }
 0x329   : > { %v1529_v58 = vpop.f32.mrf.mxu1 }
 0x32a   : > { %v1848_v58 = vld [vmem:[%s3210_s18 + $0x10] sm:$0xff] }
 0x32b   : > { %v3171_v62 = vpop.f32.mrf.mxu1  ;;  %1836 = vmatmul.mubr.f32.gmra.mxu1 %v747_v22  ;;  %v1879_v22 = vsub.f32 1.0, %v1847_v50  ;;  %v1852_v50 = vld [vmem:[%s3210_s18 + $0x30] sm:$0xff] }
 0x32c   : > { %1840 = vmatprep.mubr.f32.mxu1 %v752_v61 }
 0x32d   : > { %v1534_v57 = vpop.f32.mrf.mxu1 }
 0x32e   : > { %v1473_v57 = vadd.f32 %v3147_v19, %v3205_v23 }
 0x32f   : > { %v3173_v37 = vpop.f32.mrf.mxu1  ;;  %1841 = vmatmul.mubr.f32.gmra.mxu1 %v751_v60 }
 0x331   : > { %v1539_v5 = vpop.f32.mrf.mxu1 }
 0x333   : > { %v3175_v9 = vpop.f32.mrf.mxu1 }
 0x335   : > { %v1544_v7 = vpop.f32.mrf.mxu1 }
 0x336   : > { %v1880_v7 = vsub.f32 1.0, %v1848_v58 }
 0x337   : > { %v3177_v48 = vpop.f32.mrf.mxu1 }
 0x339   : > { %v1549_v26 = vpop.f32.mrf.mxu1 }
 0x33b   : > { %v3179_v12 = vpop.f32.mrf.mxu1 }
 0x33d   : > { %v1554_v54 = vpop.f32.mrf.mxu1 }
 0x33f   : > { %v3181_v27 = vpop.f32.mrf.mxu1 }
 0x341   : > { %v1559_v1 = vpop.f32.mrf.mxu1 }
 0x343   : > { %v3183_v46 = vpop.f32.mrf.mxu1 }
 0x345   : > { %v1564_v29 = vpop.f32.mrf.mxu1 }
 0x346   : > { %v1478_v29 = vadd.f32 %v3149_v52, %v3205_v23 }
 0x347   : > { %v3185_v0 = vpop.f32.mrf.mxu1 }
 0x349   : > { %v1569_v11 = vpop.f32.mrf.mxu1 }
 0x34b   : > { %v3187_v59 = vpop.f32.mrf.mxu1 }
 0x34d   : > { %v1574_v45 = vpop.f32.mrf.mxu1 }
 0x34e   : > { %v1881_v45 = vsub.f32 1.0, %v1849_v8  ;;  %v1503_v8 = vadd.f32 %v3159_v31, %v3205_v23 }
 0x34f   : > { %v3189_v6 = vpop.f32.mrf.mxu1 }
 0x351   : > { %v1579_v47 = vpop.f32.mrf.mxu1 }
 0x353   : > { %v3191_v63 = vpop.f32.mrf.mxu1 }
 0x355   : > { %v1584_v10 = vpop.f32.mrf.mxu1 }
 0x356   : > { %v1850_v10 = vld [vmem:[%s3210_s18 + $0x20] sm:$0xff] }
 0x357   : > { %v3193_v55 = vpop.f32.mrf.mxu1 }
 0x359   : > { %v1589_v30 = vpop.f32.mrf.mxu1 }
 0x35b   : > { %v3195_v13 = vpop.f32.mrf.mxu1 }
 0x35d   : > { %v1594_v51 = vpop.f32.mrf.mxu1 }
 0x35e   : > { %v1483_v51 = vadd.f32 %v3151_v40, %v3205_v23 }
 0x35f   : > { %v3197_v20 = vpop.f32.mrf.mxu1 }
 0x361   : > { %v1599_v14 = vpop.f32.mrf.mxu1 }
 0x363   : > { %v3199_v35 = vpop.f32.mrf.mxu1 }
 0x365   : > { %v1604_v17 = vpop.f32.mrf.mxu1 }
 0x366   : > { %v1882_v17 = vsub.f32 1.0, %v1850_v10 }
 0x367   : > { %v3201_v38 = vpop.f32.mrf.mxu1 }
 0x369   : > { %v1609_v15 = vpop.f32.mrf.mxu1 }
 0x36b   : > { %v3203_v34 = vpop.f32.mrf.mxu1 }
 0x36d   : > { %v1614_v16 = vpop.f32.mrf.mxu1 }
 0x36e   : > { %v1851_v16 = vld [vmem:[%s3210_s18 + $0x28] sm:$0xff] }
 0x36f   : > { %v3207_v41 = vpop.f32.mrf.mxu1 }
 0x371   : > { %v1619_v32 = vpop.f32.mrf.mxu1 }
 0x372   : > { %v1488_v32 = vadd.f32 %v3153_v43, %v3205_v23 }
 0x373   : > { %v1687_v36 = vpop.f32.mrf.mxu1 }
 0x374   : > { %v1688_v24 = vadd.f32 %v1687_v36, %v1463_v39 }
 0x375   : > { %v1689_v42 = vpop.f32.mrf.mxu1 }
 0x376   : > { %v1910_v4 = vmul.f32 %v1878_v44, %v1688_v24  ;;  %v1883_v44 = vsub.f32 1.0, %v1851_v16  ;;  %v1493_v42 = vadd.f32 %v3155_v3, %v3205_v23 }
 0x377   : > { %v1692_v61 = vpop.f32.mrf.mxu1 }
 0x378   : > { %1942 = vst [vmem:[%s3220_s25] sm:$0xff] %v1910_v4  ;;  %v1693_v18 = vadd.f32 %v1692_v61, %v1468_v53  ;;  %v1884_v4 = vsub.f32 1.0, %v1852_v50  ;;  %v1853_v61 = vld [vmem:[%s3210_s18 + $0x38] sm:$0xff] }
 0x379   : > { %v1694_v60 = vpop.f32.mrf.mxu1 }
 0x37a   : > { %v1911_v5 = vmul.f32 %v1879_v22, %v1693_v18  ;;  %v1498_v18 = vadd.f32 %v3157_v49, %v3205_v23 }
 0x37b   : > { %v1697_v26 = vpop.f32.mrf.mxu1 }
 0x37c   : > { %1943 = vst [vmem:[%s3220_s25 + $0x8] sm:$0xff] %v1911_v5  ;;  %v1698_v54 = vadd.f32 %v1697_v26, %v1473_v57  ;;  %v1885_v57 = vsub.f32 1.0, %v1853_v61  ;;  %v1859_v61 = vld [vmem:[%s3210_s18 + $0x68] sm:$0xff] }
 0x37d   : > { %v1699_v1 = vpop.f32.mrf.mxu1 }
 0x37e   : > { %v1912_v11 = vmul.f32 %v1880_v7, %v1698_v54  ;;  %v1854_v7 = vld [vmem:[%s3210_s18 + $0x40] sm:$0xff] }
 0x37f   : > { %v1702_v47 = vpop.f32.mrf.mxu1  ;;  %v1886_v1 = vsub.f32 1.0, %v1854_v7 }
 0x380   : > { %1944 = vst [vmem:[%s3220_s25 + $0x10] sm:$0xff] %v1912_v11  ;;  %v1703_v19 = vadd.f32 %v1702_v47, %v1478_v29  ;;  %v1855_v11 = vld [vmem:[%s3210_s18 + $0x48] sm:$0xff]  ;;  %v1508_v47 = vadd.f32 %v3161_v21, %v3205_v23 }
 0x381   : > { %v1704_v30 = vpop.f32.mrf.mxu1 }
 0x382   : > { %v1913_v14 = vmul.f32 %v1881_v45, %v1703_v19  ;;  %v1887_v19 = vsub.f32 1.0, %v1855_v11  ;;  %v1538_v11 = vadd.f32 %v3173_v37, %v3205_v23 }
 0x383   : > { %v1707_v15 = vpop.f32.mrf.mxu1 }
 0x384   : > { %1945 = vst [vmem:[%s3220_s25 + $0x18] sm:$0xff] %v1913_v14  ;;  %v1708_v52 = vadd.f32 %v1707_v15, %v1483_v51  ;;  %v1856_v51 = vld [vmem:[%s3210_s18 + $0x50] sm:$0xff] }
 0x385   : > { %v1709_v28 = vpop.f32.mrf.mxu1  ;;  %v1888_v16 = vsub.f32 1.0, %v1856_v51 }
 0x386   : > { %v1914_v39 = vmul.f32 %v1882_v17, %v1708_v52  ;;  %v1513_v17 = vadd.f32 %v3163_v25, %v3205_v23  ;;  %v1857_v28 = vld [vmem:[%s3210_s18 + $0x58] sm:$0xff] }
 0x387   : > { %v1712_v36 = vpop.f32.mrf.mxu1 }
 0x388   : > { %1946 = vst [vmem:[%s3220_s25 + $0x20] sm:$0xff] %v1914_v39  ;;  %v1713_v40 = vadd.f32 %v1712_v36, %v1488_v32  ;;  %v1518_v39 = vadd.f32 %v3165_v2, %v3205_v23  ;;  %v1889_v36 = vsub.f32 1.0, %v1857_v28 }
 0x389   : > { %v1714_v24 = vpop.f32.mrf.mxu1 }
 0x38a   : > { %v1915_v53 = vmul.f32 %v1883_v44, %v1713_v40  ;;  %v1858_v40 = vld [vmem:[%s3210_s18 + $0x60] sm:$0xff] }
 0x38b   : > { %v1717_v22 = vpop.f32.mrf.mxu1 }
 0x38c   : > { %1947 = vst [vmem:[%s3220_s25 + $0x28] sm:$0xff] %v1915_v53  ;;  %v1718_v43 = vadd.f32 %v1717_v22, %v1493_v42  ;;  %v1523_v42 = vadd.f32 %v3167_v33, %v3205_v23 }
 0x38d   : > { %v1719_v58 = vpop.f32.mrf.mxu1 }
 0x38e   : > { %v1916_v60 = vmul.f32 %v1884_v4, %v1718_v43  ;;  %v1890_v4 = vsub.f32 1.0, %v1858_v40  ;;  %v1528_v58 = vadd.f32 %v3169_v56, %v3205_v23 }
 0x38f   : > { %v1722_v5 = vpop.f32.mrf.mxu1 }
 0x390   : > { %1948 = vst [vmem:[%s3220_s25 + $0x30] sm:$0xff] %v1916_v60  ;;  %v1723_v3 = vadd.f32 %v1722_v5, %v1498_v18  ;;  %v1891_v60 = vsub.f32 1.0, %v1859_v61  ;;  %v1860_v5 = vld [vmem:[%s3210_s18 + $0x70] sm:$0xff]  ;;  %v1866_v61 = vld [vmem:[%s3210_s18 + $0xa0] sm:$0xff] }
 0x391   : > { %v1724_v26 = vpop.f32.mrf.mxu1 }
 0x392   : > { %v1917_v54 = vmul.f32 %v1885_v57, %v1723_v3  ;;  %v1533_v3 = vadd.f32 %v3171_v62, %v3205_v23 }
 0x393   : > { %v1727_v29 = vpop.f32.mrf.mxu1 }
 0x394   : > { %1949 = vst [vmem:[%s3220_s25 + $0x38] sm:$0xff] %v1917_v54  ;;  %v1728_v49 = vadd.f32 %v1727_v29, %v1503_v8  ;;  %v1892_v8 = vsub.f32 1.0, %v1860_v5 }
 0x395   : > { %v1729_v45 = vpop.f32.mrf.mxu1 }
 0x396   : > { %v1918_v10 = vmul.f32 %v1886_v1, %v1728_v49  ;;  %v1861_v1 = vld [vmem:[%s3210_s18 + $0x78] sm:$0xff] }
 0x397   : > { %v1732_v30 = vpop.f32.mrf.mxu1  ;;  %v1893_v45 = vsub.f32 1.0, %v1861_v1  ;;  %v1573_v1 = vadd.f32 %v3187_v59, %v3205_v23 }
 0x398   : > { %1950 = vst [vmem:[%s3220_s25 + $0x40] sm:$0xff] %v1918_v10  ;;  %v1733_v31 = vadd.f32 %v1732_v30, %v1508_v47  ;;  %v1862_v10 = vld [vmem:[%s3210_s18 + $0x80] sm:$0xff]  ;;  %v1543_v30 = vadd.f32 %v3175_v9, %v3205_v23 }
 0x399   : > { %v1734_v14 = vpop.f32.mrf.mxu1 }
 0x39a   : > { %v1919_v15 = vmul.f32 %v1887_v19, %v1733_v31  ;;  %v1894_v31 = vsub.f32 1.0, %v1862_v10 }
 0x39b   : > { %v1737_v52 = vpop.f32.mrf.mxu1 }
 0x39c   : > { %1951 = vst [vmem:[%s3220_s25 + $0x48] sm:$0xff] %v1919_v15  ;;  %v1738_v21 = vadd.f32 %v1737_v52, %v1513_v17  ;;  %v1863_v17 = vld [vmem:[%s3210_s18 + $0x88] sm:$0xff] }
 0x39d   : > { %v1739_v32 = vpop.f32.mrf.mxu1  ;;  %v1895_v28 = vsub.f32 1.0, %v1863_v17 }
 0x39e   : > { %v1920_v44 = vmul.f32 %v1888_v16, %v1738_v21  ;;  %v1548_v16 = vadd.f32 %v3177_v48, %v3205_v23  ;;  %v1864_v32 = vld [vmem:[%s3210_s18 + $0x90] sm:$0xff] }
 0x39f   : > { %v1742_v50 = vpop.f32.mrf.mxu1 }
 0x3a0   : > { %1952 = vst [vmem:[%s3220_s25 + $0x50] sm:$0xff] %v1920_v44  ;;  %v1743_v25 = vadd.f32 %v1742_v50, %v1518_v39  ;;  %v1553_v44 = vadd.f32 %v3179_v12, %v3205_v23  ;;  %v1896_v50 = vsub.f32 1.0, %v1864_v32 }
 0x3a1   : > { %v1744_v24 = vpop.f32.mrf.mxu1 }
 0x3a2   : > { %v1921_v53 = vmul.f32 %v1889_v36, %v1743_v25  ;;  %v1865_v25 = vld [vmem:[%s3210_s18 + $0x98] sm:$0xff] }
 0x3a3   : > { %v1747_v22 = vpop.f32.mrf.mxu1 }
 0x3a4   : > { %1953 = vst [vmem:[%s3220_s25 + $0x58] sm:$0xff] %v1921_v53  ;;  %v1748_v2 = vadd.f32 %v1747_v22, %v1523_v42  ;;  %v1558_v42 = vadd.f32 %v3181_v27, %v3205_v23 }
 0x3a5   : > { %v1749_v43 = vpop.f32.mrf.mxu1 }
 0x3a6   : > { %v1922_v18 = vmul.f32 %v1890_v4, %v1748_v2  ;;  %v1897_v4 = vsub.f32 1.0, %v1865_v25  ;;  %v1563_v43 = vadd.f32 %v3183_v46, %v3205_v23  ;;  %v1873_v25 = vld [vmem:[%s3210_s18 + $0xd8] sm:$0xff] }
 0x3a7   : > { %v1752_v57 = vpop.f32.mrf.mxu1 }
 0x3a8   : > { %1954 = vst [vmem:[%s3220_s25 + $0x60] sm:$0xff] %v1922_v18  ;;  %v1753_v33 = vadd.f32 %v1752_v57, %v1528_v58  ;;  %v1898_v18 = vsub.f32 1.0, %v1866_v61  ;;  %v1867_v57 = vld [vmem:[%s3210_s18 + $0xa8] sm:$0xff] }
 0x3a9   : > { %v1754_v7 = vpop.f32.mrf.mxu1 }
 0x3aa   : > { %v1923_v26 = vmul.f32 %v1891_v60, %v1753_v33  ;;  %v1568_v33 = vadd.f32 %v3185_v0, %v3205_v23 }
 0x3ab   : > { %v1757_v54 = vpop.f32.mrf.mxu1 }
 0x3ac   : > { %1955 = vst [vmem:[%s3220_s25 + $0x68] sm:$0xff] %v1923_v26  ;;  %v1758_v56 = vadd.f32 %v1757_v54, %v1533_v3  ;;  %v1899_v3 = vsub.f32 1.0, %v1867_v57  ;;  %v1608_v57 = vadd.f32 %v3201_v38, %v3205_v23 }
 0x3ad   : > { %v1759_v29 = vpop.f32.mrf.mxu1 }
 0x3ae   : > { %v1924_v49 = vmul.f32 %v1892_v8, %v1758_v56  ;;  %v1868_v8 = vld [vmem:[%s3210_s18 + $0xb0] sm:$0xff] }
 0x3af   : > { %v1762_v47 = vpop.f32.mrf.mxu1  ;;  %v1900_v29 = vsub.f32 1.0, %v1868_v8 }
 0x3b0   : > { %1956 = vst [vmem:[%s3220_s25 + $0x70] sm:$0xff] %v1924_v49  ;;  %v1763_v62 = vadd.f32 %v1762_v47, %v1538_v11  ;;  %v1869_v49 = vld [vmem:[%s3210_s18 + $0xb8] sm:$0xff]  ;;  %v1578_v47 = vadd.f32 %v3189_v6, %v3205_v23 }
 0x3b1   : > { %v1764_v19 = vpop.f32.mrf.mxu1 }
 0x3b2   : > { %v1925_v51 = vmul.f32 %v1893_v45, %v1763_v62  ;;  %v1901_v62 = vsub.f32 1.0, %v1869_v49 }
 0x3b3   : > { %v1767_v14 = vpop.f32.mrf.mxu1 }
 0x3b4   : > { %1957 = vst [vmem:[%s3220_s25 + $0x78] sm:$0xff] %v1925_v51  ;;  %v1768_v37 = vadd.f32 %v1767_v14, %v1543_v30  ;;  %v1870_v30 = vld [vmem:[%s3210_s18 + $0xc0] sm:$0xff] }
 0x3b5   : > { %v1769_v15 = vpop.f32.mrf.mxu1  ;;  %v1902_v17 = vsub.f32 1.0, %v1870_v30 }
 0x3b6   : > { %v1926_v52 = vmul.f32 %v1894_v31, %v1768_v37  ;;  %v1583_v31 = vadd.f32 %v3191_v63, %v3205_v23  ;;  %v1871_v15 = vld [vmem:[%s3210_s18 + $0xc8] sm:$0xff] }
 0x3b7   : > { %v1772_v21 = vpop.f32.mrf.mxu1 }
 0x3b8   : > { %1958 = vst [vmem:[%s3220_s25 + $0x80] sm:$0xff] %v1926_v52  ;;  %v1773_v9 = vadd.f32 %v1772_v21, %v1548_v16  ;;  %v1588_v52 = vadd.f32 %v3193_v55, %v3205_v23  ;;  %v1903_v21 = vsub.f32 1.0, %v1871_v15 }
 0x3b9   : > { %v1774_v39 = vpop.f32.mrf.mxu1 }
 0x3ba   : > { %v1927_v36 = vmul.f32 %v1895_v28, %v1773_v9  ;;  %v1872_v9 = vld [vmem:[%s3210_s18 + $0xd0] sm:$0xff] }
 0x3bb   : > { %v1777_v40 = vpop.f32.mrf.mxu1 }
 0x3bc   : > { %1959 = vst [vmem:[%s3220_s25 + $0x88] sm:$0xff] %v1927_v36  ;;  %v1778_v48 = vadd.f32 %v1777_v40, %v1553_v44  ;;  %v1593_v44 = vadd.f32 %v3195_v13, %v3205_v23 }
 0x3bd   : > { %v1779_v24 = vpop.f32.mrf.mxu1 }
 0x3be   : > { %v1928_v53 = vmul.f32 %v1896_v50, %v1778_v48  ;;  %v1904_v50 = vsub.f32 1.0, %v1872_v9  ;;  %v1598_v24 = vadd.f32 %v3197_v20, %v3205_v23 }
 0x3bf   : > { %v1782_v22 = vpop.f32.mrf.mxu1 }
 0x3c0   : > { %1960 = vst [vmem:[%s3220_s25 + $0x90] sm:$0xff] %v1928_v53  ;;  %v1783_v12 = vadd.f32 %v1782_v22, %v1558_v42  ;;  %v1905_v53 = vsub.f32 1.0, %v1873_v25  ;;  %v1874_v22 = vld [vmem:[%s3210_s18 + $0xe0] sm:$0xff] }
 0x3c1   : > { %v1784_v2 = vpop.f32.mrf.mxu1 }
 0x3c2   : > { %v1929_v58 = vmul.f32 %v1897_v4, %v1783_v12  ;;  %v1603_v12 = vadd.f32 %v3199_v35, %v3205_v23 }
 0x3c3   : > { %v1787_v60 = vpop.f32.mrf.mxu1 }
 0x3c4   : > { %1961 = vst [vmem:[%s3220_s25 + $0x98] sm:$0xff] %v1929_v58  ;;  %v1788_v27 = vadd.f32 %v1787_v60, %v1563_v43  ;;  %v1906_v43 = vsub.f32 1.0, %v1874_v22 }
 0x3c5   : > { %v1789_v5 = vpop.f32.mrf.mxu1 }
 0x3c6   : > { %v1930_v7 = vmul.f32 %v1898_v18, %v1788_v27  ;;  %v1875_v18 = vld [vmem:[%s3210_s18 + $0xe8] sm:$0xff] }
 0x3c7   : > { %v1792_v26 = vpop.f32.mrf.mxu1  ;;  %v1907_v5 = vsub.f32 1.0, %v1875_v18 }
 0x3c8   : > { %1962 = vst [vmem:[%s3220_s25 + $0xa0] sm:$0xff] %v1930_v7  ;;  %v1793_v46 = vadd.f32 %v1792_v26, %v1568_v33  ;;  %v1876_v7 = vld [vmem:[%s3210_s18 + $0xf0] sm:$0xff]  ;;  %v1613_v26 = vadd.f32 %v3203_v34, %v3205_v23 }
 0x3c9   : > { %v1794_v54 = vpop.f32.mrf.mxu1 }
 0x3ca   : > { %v1931_v56 = vmul.f32 %v1899_v3, %v1793_v46  ;;  %v1908_v46 = vsub.f32 1.0, %v1876_v7 }
 0x3cb   : > { %v1797_v11 = vpop.f32.mrf.mxu1 }
 0x3cc   : > { %1963 = vst [vmem:[%s3220_s25 + $0xa8] sm:$0xff] %v1931_v56  ;;  %v1798_v0 = vadd.f32 %v1797_v11, %v1573_v1  ;;  %v1877_v1 = vld [vmem:[%s3210_s18 + $0xf8] sm:$0xff] }
 0x3cd   : > { %v1799_v45 = vpop.f32.mrf.mxu1  ;;  %v1909_v49 = vsub.f32 1.0, %v1877_v1 }
 0x3ce   : > { %v1932_v10 = vmul.f32 %v1900_v29, %v1798_v0  ;;  %v1618_v29 = vadd.f32 %v3207_v41, %v3205_v23 }
 0x3cf   : > { %v1802_v19 = vpop.f32.mrf.mxu1 }
 0x3d0   : > { %1964 = vst [vmem:[%s3220_s25 + $0xb0] sm:$0xff] %v1932_v10  ;;  %v1803_v59 = vadd.f32 %v1802_v19, %v1578_v47 }
 0x3d1   : > { %v1804_v51 = vpop.f32.mrf.mxu1 }
 0x3d2   : > { %v1933_v14 = vmul.f32 %v1901_v62, %v1803_v59 }
 0x3d3   : > { %v1807_v37 = vpop.f32.mrf.mxu1 }
 0x3d4   : > { %1965 = vst [vmem:[%s3220_s25 + $0xb8] sm:$0xff] %v1933_v14  ;;  %v1808_v6 = vadd.f32 %v1807_v37, %v1583_v31 }
 0x3d5   : > { %v1809_v16 = vpop.f32.mrf.mxu1 }
 0x3d6   : > { %v1934_v28 = vmul.f32 %v1902_v17, %v1808_v6 }
 0x3d7   : > { %v1812_v32 = vpop.f32.mrf.mxu1 }
 0x3d8   : > { %1966 = vst [vmem:[%s3220_s25 + $0xc0] sm:$0xff] %v1934_v28  ;;  %v1813_v63 = vadd.f32 %v1812_v32, %v1588_v52 }
 0x3d9   : > { %v1814_v39 = vpop.f32.mrf.mxu1 }
 0x3da   : > { %v1935_v36 = vmul.f32 %v1903_v21, %v1813_v63 }
 0x3db   : > { %v1817_v40 = vpop.f32.mrf.mxu1 }
 0x3dc   : > { %1967 = vst [vmem:[%s3220_s25 + $0xc8] sm:$0xff] %v1935_v36  ;;  %v1818_v55 = vadd.f32 %v1817_v40, %v1593_v44 }
 0x3dd   : > { %v1819_v48 = vpop.f32.mrf.mxu1 }
 0x3de   : > { %v1936_v42 = vmul.f32 %v1904_v50, %v1818_v55 }
 0x3df   : > { %v1822_v4 = vpop.f32.mrf.mxu1 }
 0x3e0   : > { %1968 = vst [vmem:[%s3220_s25 + $0xd0] sm:$0xff] %v1936_v42  ;;  %v1823_v13 = vadd.f32 %v1822_v4, %v1598_v24 }
 0x3e1   : > { %v1824_v61 = vpop.f32.mrf.mxu1 }
 0x3e2   : > { %v1937_v2 = vmul.f32 %v1905_v53, %v1823_v13 }
 0x3e3   : > { %v1827_v58 = vpop.f32.mrf.mxu1 }
 0x3e4   : > { %1969 = vst [vmem:[%s3220_s25 + $0xd8] sm:$0xff] %v1937_v2  ;;  %v1828_v20 = vadd.f32 %v1827_v58, %v1603_v12 }
 0x3e5   : > { %v1829_v60 = vpop.f32.mrf.mxu1 }
 0x3e6   : > { %v1938_v27 = vmul.f32 %v1906_v43, %v1828_v20 }
 0x3e7   : > { %v1832_v33 = vpop.f32.mrf.mxu1 }
 0x3e8   : > { %1970 = vst [vmem:[%s3220_s25 + $0xe0] sm:$0xff] %v1938_v27  ;;  %v1833_v35 = vadd.f32 %v1832_v33, %v1608_v57 }
 0x3e9   : > { %v1834_v3 = vpop.f32.mrf.mxu1 }
 0x3ea   : > { %v1939_v8 = vmul.f32 %v1907_v5, %v1833_v35 }
 0x3eb   : > { %v1837_v54 = vpop.f32.mrf.mxu1 }
 0x3ec   : > { %1971 = vst [vmem:[%s3220_s25 + $0xe8] sm:$0xff] %v1939_v8  ;;  %v1838_v38 = vadd.f32 %v1837_v54, %v1613_v26 }
 0x3ed   : > { %v1839_v56 = vpop.f32.mrf.mxu1 }
 0x3ee   : > { %v1940_v11 = vmul.f32 %v1908_v46, %v1838_v38 }
 0x3ef   : > { %v1842_v0 = vpop.f32.mrf.mxu1 }
 0x3f0   : > { %1972 = vst [vmem:[%s3220_s25 + $0xf0] sm:$0xff] %v1940_v11  ;;  %v1843_v34 = vadd.f32 %v1842_v0, %v1618_v29 }
 0x3f1   : > { %v1844_v45 = vpop.f32.mrf.mxu1 }
 0x3f2   : > { %v1941_v47 = vmul.f32 %v1909_v49, %v1843_v34 }
 0x3f4   : > { %1973 = vst [vmem:[%s3220_s25 + $0xf8] sm:$0xff] %v1941_v47 }
 0x3f5   : > { %2375 = shalt.err (!%p2372_p4)
}
 0x3f6   : > { %s2376_s28 = scalar_lea.hbm %s3347_s20, 4096  ;;  %s2380_s30 = scalar_lea.hbm %s3401_s6, 8192 }
 0x3f7   : > { %p2377_p6 = scmp.ne.s32.totalorder %s3347_s20, %s2376_s28  ;;  %p2381_p0 = scmp.lt.s32.totalorder %s3347_s20, %s3401_s6 }
 0x3f8   : > { %p2382_p7 = scmp.lt.s32.totalorder %s2380_s30, %s2376_s28 }
 0x3f9   : > { %p2378_p13 = pnand %p2377_p6, %p3447_p8 }
 0x3fa   : > { %p2383_p11 = por %p2382_p7, %p2381_p0 }
 0x3fb   : > { %p2379_p2 = pneg %p2378_p13 }
 0x3fd   : > { %p2384_p3 = pnand %p2383_p11, %p2379_p2 }
 0x3ff   : > { %2387 = shalt.err (!%p2384_p3)
}
 0x400   : > { %s2447_s22 = smov 128   ;;  %s2448_s27 = smov 256  }
 0x401   : > { %s2449_s12 = smov 8  }
 0x402   : > { %2155 = dma.vmem_to_hbm [thread:$0]  (%p3447_p8), %s3349_s21, 4096, %s3347_s20, %s3354_s0, %s2447_s22, %s2448_s27, %s2449_s12  }
 0x403 PF: > { %s3448_s13 = sld [smem:[#allocation17_spill]] }
 0x404   : > { %s3449_s1 = sld [smem:[#allocation22_spill]] }
 0x405   : > { %s3450_s9 = sld [smem:[#allocation19_spill]] }
 0x409   : > { %s2002_s7 = sand.u32 1, %s3448_s13  }
 0x40a   : > { %p3451_p9 = scmp.ne.s32.totalorder %s3449_s1, 0  ;;  %s2003_s18 = scalar_lea.sflag [#allocation6], %s2002_s7 }
 0x40b   : > { %p3452_p10 = scmp.ge.s32.totalorder %s3450_s9, 2 }
 0x40d   : > { %p2175_p1 = pnand %p3452_p10, %p3451_p9 }
 0x40f   : > { %p2176_p5 = pneg %p2175_p1 }
 0x411   : > { %2417 = dma.done.wait (%p2176_p5), %s2003_s18, 4096  }
 0x412   : > { %2419 = vsyncadd (%p2176_p5), %s2003_s18, 4294963200  ;;  %s3453_s26 = sld [smem:[#allocation20_spill]]  ;;  %s3456_s23 = smov %s2426_s24 }
 0x413   : > { %s3454_s25 = sld [smem:[#allocation18_spill]] }
 0x414   : > { %s3455_s19 = sld [smem:[#allocation21_spill]] }
 0x418   : > { %p19_p12 = scmp.ge.s32.totalorder %s3453_s26, 4  }
 0x419   : > { %s3457_s24 = smov %s3454_s25 }
 0x41a   : > { %s3458_s25 = smov %s3455_s19  ;;  %21 = sbr.rel (!%p19_p12) target bundleno = 9 (0x9), region = 118 }
 0x41f   :  { %2008 = vsyncpa [#allocation5], 1 }
 0x420   :  { %2010 = vsyncpa [#allocation5 + $0x1], 1 }
 0x421   :  { %2011 = vsyncpa [#allocation8], 1 }
 0x422   :  { %2012 = vsyncpa [#allocation6], 1 }
 0x423   :  { %2014 = vsyncpa [#allocation6 + $0x1], 1 }

</bundles_post_ra>
